<compile_context>
chip_gen: v5e
topology: v5e:2x2
jax: 0.10.0
libtpu: 0.0.40
codegen_flags: <defaults>
</compile_context>

<pallas_src>
import jax
import jax.numpy as jnp
import numpy as np
from jax.experimental import pallas as pl
from jax.experimental.pallas import tpu as pltpu

PAD_ID = 0
CH = 8  # time-chunk (sublane-aligned) processed per grid step


def _round_up(x, m):
    return ((x + m - 1) // m) * m


def gru_kernel(x_ref, len_ref, wih_ref, whh_ref, bhn_ref,
               out_ref, hlast_ref, h_scr):
    """One grid step == CH timesteps of the recurrence for one batch tile.

    x_ref    : [TB, CH, E1]     embedded tokens (+ ones column), batch-first
    len_ref  : [TB, 1]          int32 sequence lengths
    wih_ref  : [E1, 3*Hp]       gate-packed W_ih; last used row = folded biases
    whh_ref  : [H, 3*Hp]        gate-packed W_hh (native K = H)
    bhn_ref  : [1, H]           b_hh of the n gate (cannot be folded)
    out_ref  : [TB, CH, H]      per-step outputs, batch-first, native H lanes
    hlast_ref: [TB, H]          final hidden state (resident across time chunks)
    h_scr    : [TB, H]          recurrent carry across time chunks (VMEM scratch)
    """
    c = pl.program_id(1)
    TB = x_ref.shape[0]
    H = out_ref.shape[2]
    Hp = whh_ref.shape[1] // 3          # lane-aligned per-gate stride

    @pl.when(c == 0)
    def _():
        h_scr[...] = jnp.zeros_like(h_scr)

    lengths = len_ref[...]                                  # [TB, 1] int32
    # Small weight values (~12 vregs each since K is native, not 128-padded).
    wih = wih_ref[...]
    whh = whh_ref[...]
    bhn = jnp.broadcast_to(bhn_ref[...], (TB, H))           # hoisted broadcast

    h = h_scr[...]                                          # carried in vregs
    t0 = c * CH
    for j in range(CH):                                     # static 8-step unroll
        x = x_ref[:, j, :]                                  # [TB, E1]
        # gi already contains b_ih (all gates) + b_hh (r,z) via the ones column.
        gi = jnp.dot(x, wih, preferred_element_type=jnp.float32)   # [TB, 3*Hp]
        gh = jnp.dot(h, whh, preferred_element_type=jnp.float32)   # [TB, 3*Hp]

        r = jax.nn.sigmoid(gi[:, 0:H] + gh[:, 0:H])
        z = jax.nn.sigmoid(gi[:, Hp:Hp + H] + gh[:, Hp:Hp + H])
        n = jnp.tanh(gi[:, 2 * Hp:2 * Hp + H]
                     + r * (gh[:, 2 * Hp:2 * Hp + H] + bhn))
        h_new = (1.0 - z) * n + z * h

        # Packed-sequence behavior: freeze hidden past the length, zero the output.
        valid = lengths > (t0 + j)                          # [TB, 1] bool
        h = jnp.where(valid, h_new, h)
        out_ref[:, j, :] = jnp.where(valid, h_new, jnp.zeros_like(h_new))

    h_scr[...] = h
    hlast_ref[...] = h


@jax.jit
def encoder_rnn_forward(inputs, input_length, emb_table, w_ih, w_hh, b_ih, b_hh):
    """Pallas implementation of EncoderRNN.forward (GRU, 1 layer, unidirectional).

    inputs       : [B, S] int32 token ids
    input_length : [B]    int32 lengths (max(input_length) == S)
    emb_table    : [V, E] float32 (row PAD_ID is zero)
    w_ih         : [3, E, H], w_hh: [3, H, H], b_ih/b_hh: [3, 1, H]  (gate order r,z,n)

    Returns:
      outputs : [B, S, H]  (zeros at padded positions, batch_first)
      hidden  : [1, B, H]  (last valid hidden state per sequence)
    """
    B, S = inputs.shape
    V, E = emb_table.shape
    H = w_hh.shape[-1]
    f32 = jnp.float32

    # Batch tile: multiple of 8 sublanes, as large as the batch allows (cap 128;
    # on v6e/v7x a 256 cap would also be reasonable for big batches).
    TB = min(_round_up(B, 8), 128)
    B_pad = _round_up(B, TB)
    S_pad = _round_up(S, CH)
    Hp = _round_up(H, 128)               # lane-aligned per-gate stride
    G = 3 * Hp
    E1 = _round_up(E + 1, 8)             # +1 ones column for folded biases

    # Gate-packed weights; biases folded:
    #   rows [0:E)  of wih_p = W_ih
    #   row  E      of wih_p = b_ih (all gates) + b_hh (r,z gates only)
    #   bhn         = b_hh of the n gate (stays inside the r*(...) term)
    wih_p = jnp.zeros((E1, G), f32)
    whh_p = jnp.zeros((H, G), f32)
    b_fold = (b_ih[0][0] + b_hh[0][0],
              b_ih[1][0] + b_hh[1][0],
              b_ih[2][0])
    for g in range(3):
        wih_p = wih_p.at[:E, g * Hp:g * Hp + H].set(w_ih[g])
        wih_p = wih_p.at[E, g * Hp:g * Hp + H].set(b_fold[g])
        whh_p = whh_p.at[:, g * Hp:g * Hp + H].set(w_hh[g])
    bhn = b_hh[2].reshape(1, H).astype(f32)

    # Batch/time padding; padded rows get PAD tokens and length 0.
    inputs_p = jnp.full((B_pad, S_pad), PAD_ID, jnp.int32).at[:B, :S].set(inputs)
    len_p = jnp.zeros((B_pad, 1), jnp.int32).at[:B, 0].set(input_length)

    # Embedded tokens at native width E (+ ones column): minimal HBM stream,
    # batch-first so no transposes are needed anywhere.
    emb_x = jnp.take(emb_table.astype(f32), inputs_p, axis=0)    # [B_pad, S_pad, E]
    x_aug = jnp.zeros((B_pad, S_pad, E1), f32)
    x_aug = x_aug.at[:, :, :E].set(emb_x)
    x_aug = x_aug.at[:, :, E].set(1.0)

    grid = (B_pad // TB, S_pad // CH)

    grid_spec = pltpu.PrefetchScalarGridSpec(
        num_scalar_prefetch=0,
        grid=grid,
        in_specs=[
            pl.BlockSpec((TB, CH, E1), lambda b, c: (b, c, 0)),   # x (batch-first)
            pl.BlockSpec((TB, 1), lambda b, c: (b, 0)),           # lengths
            pl.BlockSpec((E1, G), lambda b, c: (0, 0)),           # packed W_ih (+bias row)
            pl.BlockSpec((H, G), lambda b, c: (0, 0)),            # packed W_hh
            pl.BlockSpec((1, H), lambda b, c: (0, 0)),            # b_hh (n gate)
        ],
        out_specs=[
            pl.BlockSpec((TB, CH, H), lambda b, c: (b, c, 0)),    # outputs (batch-first)
            pl.BlockSpec((TB, H), lambda b, c: (b, 0)),           # final hidden (resident)
        ],
        scratch_shapes=[pltpu.VMEM((TB, H), jnp.float32)],
    )

    outputs_p, h_last = pl.pallas_call(
        gru_kernel,
        out_shape=(
            jax.ShapeDtypeStruct((B_pad, S_pad, H), jnp.float32),
            jax.ShapeDtypeStruct((B_pad, H), jnp.float32),
        ),
        grid_spec=grid_spec,
        compiler_params=pltpu.CompilerParams(
            dimension_semantics=("parallel", "arbitrary")),
    )(x_aug, len_p, wih_p, whh_p, bhn)

    outputs = outputs_p[:B, :S, :]            # [B, S, H] batch_first
    hidden = h_last[None, :B, :]              # [1, B, H]
    return outputs, hidden


def reference_forward(inputs, input_length, emb_table, w_ih, w_hh, b_ih, b_hh):
    """Pure-JAX reference (same math, lax.scan) for correctness checking."""
    B, S = inputs.shape
    H = w_hh.shape[-1]
    embedded = jnp.take(emb_table, inputs, axis=0)            # [B, S, E]
    x_tm = jnp.transpose(embedded, (1, 0, 2))                 # [S, B, E]
    mask = (jnp.arange(S)[:, None] < input_length[None, :]).astype(jnp.float32)

    def step(h_prev, inp):
        x_t, m_t = inp
        m = m_t[:, None]
        gi = [x_t @ w_ih[g] + b_ih[g] for g in range(3)]
        gh = [h_prev @ w_hh[g] + b_hh[g] for g in range(3)]
        r = jax.nn.sigmoid(gi[0] + gh[0])
        z = jax.nn.sigmoid(gi[1] + gh[1])
        n = jnp.tanh(gi[2] + r * gh[2])
        h_new = (1.0 - z) * n + z * h_prev
        h_upd = m * h_new + (1.0 - m) * h_prev
        return h_upd, m * h_new

    h0 = jnp.zeros((B, H), jnp.float32)
    h_last, outs = jax.lax.scan(step, h0, (x_tm, mask))
    return jnp.transpose(outs, (1, 0, 2)), h_last[None]


if __name__ == "__main__":
    # Small shapes consistent with the module: sentence-level GRU encoder.
    vocab_size = 50
    embedding_size = 32
    hidden_size = 32
    batch = 4          # num_sentences
    seq_len = 8        # max_seq_len

    key = jax.random.PRNGKey(0)
    k_emb, k_wih, k_whh, k_bih, k_bhh, k_tok = jax.random.split(key, 6)

    # Parameters (deterministic, PyTorch-style uniform(-1/sqrt(H), 1/sqrt(H))).
    bound = 1.0 / np.sqrt(hidden_size)
    emb_table = 0.1 * jax.random.normal(k_emb, (vocab_size, embedding_size), jnp.float32)
    emb_table = emb_table.at[PAD_ID].set(0.0)  # padding_idx=PAD_ID
    w_ih = jax.random.uniform(k_wih, (3, embedding_size, hidden_size), jnp.float32,
                              -bound, bound)
    w_hh = jax.random.uniform(k_whh, (3, hidden_size, hidden_size), jnp.float32,
                              -bound, bound)
    b_ih = jax.random.uniform(k_bih, (3, 1, hidden_size), jnp.float32, -bound, bound)
    b_hh = jax.random.uniform(k_bhh, (3, 1, hidden_size), jnp.float32, -bound, bound)

    # Inputs: [batch, seq_len] int tokens; lengths with max == seq_len so that
    # pad_packed_sequence's output length equals seq_len.
    input_length = jnp.array([8, 5, 3, 6], dtype=jnp.int32)
    toks = jax.random.randint(k_tok, (batch, seq_len), 1, vocab_size, dtype=jnp.int32)
    pad_mask = jnp.arange(seq_len)[None, :] < input_length[:, None]
    inputs = jnp.where(pad_mask, toks, PAD_ID).astype(jnp.int32)

    outputs, hidden = encoder_rnn_forward(
        inputs, input_length, emb_table, w_ih, w_hh, b_ih, b_hh)
    outputs = jax.block_until_ready(outputs)
    hidden = jax.block_until_ready(hidden)

    ref_out, ref_hid = reference_forward(
        inputs, input_length, emb_table, w_ih, w_hh, b_ih, b_hh)

    assert outputs.shape == (batch, seq_len, hidden_size)
    assert hidden.shape == (1, batch, hidden_size)
    np.testing.assert_allclose(np.asarray(outputs), np.asarray(ref_out),
                               rtol=2e-5, atol=2e-5)
    np.testing.assert_allclose(np.asarray(hidden), np.asarray(ref_hid),
                               rtol=2e-5, atol=2e-5)

    print("KERNEL_OK")
</pallas_src>

<mosaic_0001>
module attributes {stable_mosaic.version = 11 : i64} {
  func.func @gru_kernel(%arg0: i32, %arg1: i32, %arg2: memref<8x8x40xf32, #tpu.memory_space<vmem>>, %arg3: memref<8x1xi32, #tpu.memory_space<vmem>>, %arg4: memref<40x384xf32, #tpu.memory_space<vmem>>, %arg5: memref<32x384xf32, #tpu.memory_space<vmem>>, %arg6: memref<1x32xf32, #tpu.memory_space<vmem>>, %arg7: memref<8x8x32xf32, #tpu.memory_space<vmem>>, %arg8: memref<8x32xf32, #tpu.memory_space<vmem>>, %arg9: memref<8x32xf32, #tpu.memory_space<vmem>>) attributes {dimension_semantics = [#tpu.dimension_semantics<parallel>, #tpu.dimension_semantics<arbitrary>], iteration_bounds = array<i64: 1, 1>, scalar_prefetch = 0 : i64, scratch_operands = 1 : i64, tpu.core_type = #tpu.core_type<tc>, window_params = [{transform_indices = @transform_0, window_bounds = array<i64: 8, 8, 40>}, {transform_indices = @transform_1, window_bounds = array<i64: 8, 1>}, {pipeline_mode = #tpu.pipeline_mode<synchronous>, transform_indices = @transform_2, window_bounds = array<i64: 40, 384>}, {pipeline_mode = #tpu.pipeline_mode<synchronous>, transform_indices = @transform_3, window_bounds = array<i64: 32, 384>}, {pipeline_mode = #tpu.pipeline_mode<synchronous>, transform_indices = @transform_4, window_bounds = array<i64: 1, 32>}, {transform_indices = @transform_5, window_bounds = array<i64: 8, 8, 32>}, {transform_indices = @transform_6, window_bounds = array<i64: 8, 32>}]} {
    %c0_i32 = arith.constant 0 : i32
    %0 = arith.cmpi eq, %arg1, %c0_i32 : i32
    %1 = arith.extui %0 : i1 to i32
    %c0_i32_0 = arith.constant 0 : i32
    %2 = arith.cmpi ne, %1, %c0_i32_0 : i32
    scf.if %2 {
      %cst_103 = arith.constant 0.000000e+00 : f32
      %365 = vector.broadcast %cst_103 : f32 to vector<8x32xf32>
      %c0_104 = arith.constant 0 : index
      %c0_105 = arith.constant 0 : index
      %366 = vector.load %arg9[%c0_104, %c0_105] : memref<8x32xf32, #tpu.memory_space<vmem>>, vector<8x32xf32>
      tpu.vector_store %arg9[%c0_104, %c0_105], %365 {strides = array<i32>} : memref<8x32xf32, #tpu.memory_space<vmem>>, vector<8x32xf32>,
    } else {
    }
    %c0 = arith.constant 0 : index
    %c0_1 = arith.constant 0 : index
    %3 = vector.load %arg3[%c0, %c0_1] : memref<8x1xi32, #tpu.memory_space<vmem>>, vector<8x1xi32>
    %c0_2 = arith.constant 0 : index
    %c0_3 = arith.constant 0 : index
    %4 = vector.load %arg4[%c0_2, %c0_3] : memref<40x384xf32, #tpu.memory_space<vmem>>, vector<40x384xf32>
    %c0_4 = arith.constant 0 : index
    %c0_5 = arith.constant 0 : index
    %5 = vector.load %arg5[%c0_4, %c0_5] : memref<32x384xf32, #tpu.memory_space<vmem>>, vector<32x384xf32>
    %c0_6 = arith.constant 0 : index
    %c0_7 = arith.constant 0 : index
    %6 = vector.load %arg6[%c0_6, %c0_7] : memref<1x32xf32, #tpu.memory_space<vmem>>, vector<1x32xf32>
    %7 = vector.shape_cast %6 : vector<1x32xf32> to vector<1x32xf32>
    %8 = vector.broadcast %7 : vector<1x32xf32> to vector<8x32xf32>
    %c0_8 = arith.constant 0 : index
    %c0_9 = arith.constant 0 : index
    %9 = vector.load %arg9[%c0_8, %c0_9] : memref<8x32xf32, #tpu.memory_space<vmem>>, vector<8x32xf32>
    %c8_i32 = arith.constant 8 : i32
    %10 = arith.muli %arg1, %c8_i32 : i32
    %c0_10 = arith.constant 0 : index
    %c0_11 = arith.constant 0 : index
    %c0_12 = arith.constant 0 : index
    %11 = vector.load %arg2[%c0_10, %c0_11, %c0_12] : memref<8x8x40xf32, #tpu.memory_space<vmem>>, vector<8x1x40xf32>
    %12 = vector.shape_cast %11 : vector<8x1x40xf32> to vector<8x40xf32>
    %cst = arith.constant dense<0.000000e+00> : vector<8x384xf32>
    %13 = tpu.matmul %12, %4, %cst {dimension_numbers = #tpu.dot_dimension_numbers<[1], [0], [0], [1], [0, 0, 1, 1], [], []>} : vector<8x40xf32>, vector<40x384xf32>, vector<8x384xf32> -> vector<8x384xf32>
    %cst_13 = arith.constant dense<0.000000e+00> : vector<8x384xf32>
    %14 = tpu.matmul %9, %5, %cst_13 {dimension_numbers = #tpu.dot_dimension_numbers<[1], [0], [0], [1], [0, 0, 1, 1], [], []>} : vector<8x32xf32>, vector<32x384xf32>, vector<8x384xf32> -> vector<8x384xf32>
    %15 = vector.extract_strided_slice %13 {offsets = [0, 0], sizes = [8, 32], strides = [1, 1]} : vector<8x384xf32> to vector<8x32xf32>
    %16 = vector.extract_strided_slice %14 {offsets = [0, 0], sizes = [8, 32], strides = [1, 1]} : vector<8x384xf32> to vector<8x32xf32>
    %17 = arith.addf %15, %16 : vector<8x32xf32>
    %18 = arith.negf %17 : vector<8x32xf32>
    %19 = math.exp %18 : vector<8x32xf32>
    %cst_14 = arith.constant 1.000000e+00 : f32
    %20 = vector.broadcast %cst_14 : f32 to vector<8x32xf32>
    %21 = arith.addf %20, %19 : vector<8x32xf32>
    %22 = arith.divf %20, %21 : vector<8x32xf32>
    %23 = vector.extract_strided_slice %13 {offsets = [0, 128], sizes = [8, 32], strides = [1, 1]} : vector<8x384xf32> to vector<8x32xf32>
    %24 = vector.extract_strided_slice %14 {offsets = [0, 128], sizes = [8, 32], strides = [1, 1]} : vector<8x384xf32> to vector<8x32xf32>
    %25 = arith.addf %23, %24 : vector<8x32xf32>
    %26 = arith.negf %25 : vector<8x32xf32>
    %27 = math.exp %26 : vector<8x32xf32>
    %cst_15 = arith.constant 1.000000e+00 : f32
    %28 = vector.broadcast %cst_15 : f32 to vector<8x32xf32>
    %29 = arith.addf %28, %27 : vector<8x32xf32>
    %30 = arith.divf %28, %29 : vector<8x32xf32>
    %31 = vector.extract_strided_slice %13 {offsets = [0, 256], sizes = [8, 32], strides = [1, 1]} : vector<8x384xf32> to vector<8x32xf32>
    %32 = vector.extract_strided_slice %14 {offsets = [0, 256], sizes = [8, 32], strides = [1, 1]} : vector<8x384xf32> to vector<8x32xf32>
    %33 = arith.addf %32, %8 : vector<8x32xf32>
    %34 = arith.mulf %22, %33 : vector<8x32xf32>
    %35 = arith.addf %31, %34 : vector<8x32xf32>
    %36 = math.tanh %35 : vector<8x32xf32>
    %cst_16 = arith.constant 1.000000e+00 : f32
    %37 = vector.broadcast %cst_16 : f32 to vector<8x32xf32>
    %38 = arith.subf %37, %30 : vector<8x32xf32>
    %39 = arith.mulf %38, %36 : vector<8x32xf32>
    %40 = arith.mulf %30, %9 : vector<8x32xf32>
    %41 = arith.addf %39, %40 : vector<8x32xf32>
    %c0_i32_17 = arith.constant 0 : i32
    %42 = arith.addi %10, %c0_i32_17 : i32
    %43 = vector.broadcast %42 : i32 to vector<8x1xi32>
    %44 = arith.cmpi sgt, %3, %43 : vector<8x1xi32>
    %45 = vector.shape_cast %44 : vector<8x1xi1> to vector<8x1xi1>
    %46 = vector.broadcast %45 : vector<8x1xi1> to vector<8x32xi1>
    %47 = arith.select %46, %41, %9 : vector<8x32xi1>, vector<8x32xf32>
    %cst_18 = arith.constant 0.000000e+00 : f32
    %48 = vector.broadcast %cst_18 : f32 to vector<8x32xf32>
    %49 = vector.shape_cast %44 : vector<8x1xi1> to vector<8x1xi1>
    %50 = vector.broadcast %49 : vector<8x1xi1> to vector<8x32xi1>
    %51 = arith.select %50, %41, %48 : vector<8x32xi1>, vector<8x32xf32>
    %c0_19 = arith.constant 0 : index
    %c0_20 = arith.constant 0 : index
    %c0_21 = arith.constant 0 : index
    %52 = vector.load %arg7[%c0_19, %c0_20, %c0_21] : memref<8x8x32xf32, #tpu.memory_space<vmem>>, vector<8x1x32xf32>
    %53 = vector.shape_cast %52 : vector<8x1x32xf32> to vector<8x32xf32>
    %54 = vector.shape_cast %51 : vector<8x32xf32> to vector<8x1x32xf32>
    tpu.vector_store %arg7[%c0_19, %c0_20, %c0_21], %54 {strides = array<i32>} : memref<8x8x32xf32, #tpu.memory_space<vmem>>, vector<8x1x32xf32>,
    %c0_22 = arith.constant 0 : index
    %c1 = arith.constant 1 : index
    %c0_23 = arith.constant 0 : index
    %55 = vector.load %arg2[%c0_22, %c1, %c0_23] : memref<8x8x40xf32, #tpu.memory_space<vmem>>, vector<8x1x40xf32>
    %56 = vector.shape_cast %55 : vector<8x1x40xf32> to vector<8x40xf32>
    %cst_24 = arith.constant dense<0.000000e+00> : vector<8x384xf32>
    %57 = tpu.matmul %56, %4, %cst_24 {dimension_numbers = #tpu.dot_dimension_numbers<[1], [0], [0], [1], [0, 0, 1, 1], [], []>} : vector<8x40xf32>, vector<40x384xf32>, vector<8x384xf32> -> vector<8x384xf32>
    %cst_25 = arith.constant dense<0.000000e+00> : vector<8x384xf32>
    %58 = tpu.matmul %47, %5, %cst_25 {dimension_numbers = #tpu.dot_dimension_numbers<[1], [0], [0], [1], [0, 0, 1, 1], [], []>} : vector<8x32xf32>, vector<32x384xf32>, vector<8x384xf32> -> vector<8x384xf32>
    %59 = vector.extract_strided_slice %57 {offsets = [0, 0], sizes = [8, 32], strides = [1, 1]} : vector<8x384xf32> to vector<8x32xf32>
    %60 = vector.extract_strided_slice %58 {offsets = [0, 0], sizes = [8, 32], strides = [1, 1]} : vector<8x384xf32> to vector<8x32xf32>
    %61 = arith.addf %59, %60 : vector<8x32xf32>
    %62 = arith.negf %61 : vector<8x32xf32>
    %63 = math.exp %62 : vector<8x32xf32>
    %cst_26 = arith.constant 1.000000e+00 : f32
    %64 = vector.broadcast %cst_26 : f32 to vector<8x32xf32>
    %65 = arith.addf %64, %63 : vector<8x32xf32>
    %66 = arith.divf %64, %65 : vector<8x32xf32>
    %67 = vector.extract_strided_slice %57 {offsets = [0, 128], sizes = [8, 32], strides = [1, 1]} : vector<8x384xf32> to vector<8x32xf32>
    %68 = vector.extract_strided_slice %58 {offsets = [0, 128], sizes = [8, 32], strides = [1, 1]} : vector<8x384xf32> to vector<8x32xf32>
    %69 = arith.addf %67, %68 : vector<8x32xf32>
    %70 = arith.negf %69 : vector<8x32xf32>
    %71 = math.exp %70 : vector<8x32xf32>
    %cst_27 = arith.constant 1.000000e+00 : f32
    %72 = vector.broadcast %cst_27 : f32 to vector<8x32xf32>
    %73 = arith.addf %72, %71 : vector<8x32xf32>
    %74 = arith.divf %72, %73 : vector<8x32xf32>
    %75 = vector.extract_strided_slice %57 {offsets = [0, 256], sizes = [8, 32], strides = [1, 1]} : vector<8x384xf32> to vector<8x32xf32>
    %76 = vector.extract_strided_slice %58 {offsets = [0, 256], sizes = [8, 32], strides = [1, 1]} : vector<8x384xf32> to vector<8x32xf32>
    %77 = arith.addf %76, %8 : vector<8x32xf32>
    %78 = arith.mulf %66, %77 : vector<8x32xf32>
    %79 = arith.addf %75, %78 : vector<8x32xf32>
    %80 = math.tanh %79 : vector<8x32xf32>
    %cst_28 = arith.constant 1.000000e+00 : f32
    %81 = vector.broadcast %cst_28 : f32 to vector<8x32xf32>
    %82 = arith.subf %81, %74 : vector<8x32xf32>
    %83 = arith.mulf %82, %80 : vector<8x32xf32>
    %84 = arith.mulf %74, %47 : vector<8x32xf32>
    %85 = arith.addf %83, %84 : vector<8x32xf32>
    %c1_i32 = arith.constant 1 : i32
    %86 = arith.addi %10, %c1_i32 : i32
    %87 = vector.broadcast %86 : i32 to vector<8x1xi32>
    %88 = arith.cmpi sgt, %3, %87 : vector<8x1xi32>
    %89 = vector.shape_cast %88 : vector<8x1xi1> to vector<8x1xi1>
    %90 = vector.broadcast %89 : vector<8x1xi1> to vector<8x32xi1>
    %91 = arith.select %90, %85, %47 : vector<8x32xi1>, vector<8x32xf32>
    %cst_29 = arith.constant 0.000000e+00 : f32
    %92 = vector.broadcast %cst_29 : f32 to vector<8x32xf32>
    %93 = vector.shape_cast %88 : vector<8x1xi1> to vector<8x1xi1>
    %94 = vector.broadcast %93 : vector<8x1xi1> to vector<8x32xi1>
    %95 = arith.select %94, %85, %92 : vector<8x32xi1>, vector<8x32xf32>
    %c0_30 = arith.constant 0 : index
    %c1_31 = arith.constant 1 : index
    %c0_32 = arith.constant 0 : index
    %96 = vector.load %arg7[%c0_30, %c1_31, %c0_32] : memref<8x8x32xf32, #tpu.memory_space<vmem>>, vector<8x1x32xf32>
    %97 = vector.shape_cast %96 : vector<8x1x32xf32> to vector<8x32xf32>
    %98 = vector.shape_cast %95 : vector<8x32xf32> to vector<8x1x32xf32>
    tpu.vector_store %arg7[%c0_30, %c1_31, %c0_32], %98 {strides = array<i32>} : memref<8x8x32xf32, #tpu.memory_space<vmem>>, vector<8x1x32xf32>,
    %c0_33 = arith.constant 0 : index
    %c2 = arith.constant 2 : index
    %c0_34 = arith.constant 0 : index
    %99 = vector.load %arg2[%c0_33, %c2, %c0_34] : memref<8x8x40xf32, #tpu.memory_space<vmem>>, vector<8x1x40xf32>
    %100 = vector.shape_cast %99 : vector<8x1x40xf32> to vector<8x40xf32>
    %cst_35 = arith.constant dense<0.000000e+00> : vector<8x384xf32>
    %101 = tpu.matmul %100, %4, %cst_35 {dimension_numbers = #tpu.dot_dimension_numbers<[1], [0], [0], [1], [0, 0, 1, 1], [], []>} : vector<8x40xf32>, vector<40x384xf32>, vector<8x384xf32> -> vector<8x384xf32>
    %cst_36 = arith.constant dense<0.000000e+00> : vector<8x384xf32>
    %102 = tpu.matmul %91, %5, %cst_36 {dimension_numbers = #tpu.dot_dimension_numbers<[1], [0], [0], [1], [0, 0, 1, 1], [], []>} : vector<8x32xf32>, vector<32x384xf32>, vector<8x384xf32> -> vector<8x384xf32>
    %103 = vector.extract_strided_slice %101 {offsets = [0, 0], sizes = [8, 32], strides = [1, 1]} : vector<8x384xf32> to vector<8x32xf32>
    %104 = vector.extract_strided_slice %102 {offsets = [0, 0], sizes = [8, 32], strides = [1, 1]} : vector<8x384xf32> to vector<8x32xf32>
    %105 = arith.addf %103, %104 : vector<8x32xf32>
    %106 = arith.negf %105 : vector<8x32xf32>
    %107 = math.exp %106 : vector<8x32xf32>
    %cst_37 = arith.constant 1.000000e+00 : f32
    %108 = vector.broadcast %cst_37 : f32 to vector<8x32xf32>
    %109 = arith.addf %108, %107 : vector<8x32xf32>
    %110 = arith.divf %108, %109 : vector<8x32xf32>
    %111 = vector.extract_strided_slice %101 {offsets = [0, 128], sizes = [8, 32], strides = [1, 1]} : vector<8x384xf32> to vector<8x32xf32>
    %112 = vector.extract_strided_slice %102 {offsets = [0, 128], sizes = [8, 32], strides = [1, 1]} : vector<8x384xf32> to vector<8x32xf32>
    %113 = arith.addf %111, %112 : vector<8x32xf32>
    %114 = arith.negf %113 : vector<8x32xf32>
    %115 = math.exp %114 : vector<8x32xf32>
    %cst_38 = arith.constant 1.000000e+00 : f32
    %116 = vector.broadcast %cst_38 : f32 to vector<8x32xf32>
    %117 = arith.addf %116, %115 : vector<8x32xf32>
    %118 = arith.divf %116, %117 : vector<8x32xf32>
    %119 = vector.extract_strided_slice %101 {offsets = [0, 256], sizes = [8, 32], strides = [1, 1]} : vector<8x384xf32> to vector<8x32xf32>
    %120 = vector.extract_strided_slice %102 {offsets = [0, 256], sizes = [8, 32], strides = [1, 1]} : vector<8x384xf32> to vector<8x32xf32>
    %121 = arith.addf %120, %8 : vector<8x32xf32>
    %122 = arith.mulf %110, %121 : vector<8x32xf32>
    %123 = arith.addf %119, %122 : vector<8x32xf32>
    %124 = math.tanh %123 : vector<8x32xf32>
    %cst_39 = arith.constant 1.000000e+00 : f32
    %125 = vector.broadcast %cst_39 : f32 to vector<8x32xf32>
    %126 = arith.subf %125, %118 : vector<8x32xf32>
    %127 = arith.mulf %126, %124 : vector<8x32xf32>
    %128 = arith.mulf %118, %91 : vector<8x32xf32>
    %129 = arith.addf %127, %128 : vector<8x32xf32>
    %c2_i32 = arith.constant 2 : i32
    %130 = arith.addi %10, %c2_i32 : i32
    %131 = vector.broadcast %130 : i32 to vector<8x1xi32>
    %132 = arith.cmpi sgt, %3, %131 : vector<8x1xi32>
    %133 = vector.shape_cast %132 : vector<8x1xi1> to vector<8x1xi1>
    %134 = vector.broadcast %133 : vector<8x1xi1> to vector<8x32xi1>
    %135 = arith.select %134, %129, %91 : vector<8x32xi1>, vector<8x32xf32>
    %cst_40 = arith.constant 0.000000e+00 : f32
    %136 = vector.broadcast %cst_40 : f32 to vector<8x32xf32>
    %137 = vector.shape_cast %132 : vector<8x1xi1> to vector<8x1xi1>
    %138 = vector.broadcast %137 : vector<8x1xi1> to vector<8x32xi1>
    %139 = arith.select %138, %129, %136 : vector<8x32xi1>, vector<8x32xf32>
    %c0_41 = arith.constant 0 : index
    %c2_42 = arith.constant 2 : index
    %c0_43 = arith.constant 0 : index
    %140 = vector.load %arg7[%c0_41, %c2_42, %c0_43] : memref<8x8x32xf32, #tpu.memory_space<vmem>>, vector<8x1x32xf32>
    %141 = vector.shape_cast %140 : vector<8x1x32xf32> to vector<8x32xf32>
    %142 = vector.shape_cast %139 : vector<8x32xf32> to vector<8x1x32xf32>
    tpu.vector_store %arg7[%c0_41, %c2_42, %c0_43], %142 {strides = array<i32>} : memref<8x8x32xf32, #tpu.memory_space<vmem>>, vector<8x1x32xf32>,
    %c0_44 = arith.constant 0 : index
    %c3 = arith.constant 3 : index
    %c0_45 = arith.constant 0 : index
    %143 = vector.load %arg2[%c0_44, %c3, %c0_45] : memref<8x8x40xf32, #tpu.memory_space<vmem>>, vector<8x1x40xf32>
    %144 = vector.shape_cast %143 : vector<8x1x40xf32> to vector<8x40xf32>
    %cst_46 = arith.constant dense<0.000000e+00> : vector<8x384xf32>
    %145 = tpu.matmul %144, %4, %cst_46 {dimension_numbers = #tpu.dot_dimension_numbers<[1], [0], [0], [1], [0, 0, 1, 1], [], []>} : vector<8x40xf32>, vector<40x384xf32>, vector<8x384xf32> -> vector<8x384xf32>
    %cst_47 = arith.constant dense<0.000000e+00> : vector<8x384xf32>
    %146 = tpu.matmul %135, %5, %cst_47 {dimension_numbers = #tpu.dot_dimension_numbers<[1], [0], [0], [1], [0, 0, 1, 1], [], []>} : vector<8x32xf32>, vector<32x384xf32>, vector<8x384xf32> -> vector<8x384xf32>
    %147 = vector.extract_strided_slice %145 {offsets = [0, 0], sizes = [8, 32], strides = [1, 1]} : vector<8x384xf32> to vector<8x32xf32>
    %148 = vector.extract_strided_slice %146 {offsets = [0, 0], sizes = [8, 32], strides = [1, 1]} : vector<8x384xf32> to vector<8x32xf32>
    %149 = arith.addf %147, %148 : vector<8x32xf32>
    %150 = arith.negf %149 : vector<8x32xf32>
    %151 = math.exp %150 : vector<8x32xf32>
    %cst_48 = arith.constant 1.000000e+00 : f32
    %152 = vector.broadcast %cst_48 : f32 to vector<8x32xf32>
    %153 = arith.addf %152, %151 : vector<8x32xf32>
    %154 = arith.divf %152, %153 : vector<8x32xf32>
    %155 = vector.extract_strided_slice %145 {offsets = [0, 128], sizes = [8, 32], strides = [1, 1]} : vector<8x384xf32> to vector<8x32xf32>
    %156 = vector.extract_strided_slice %146 {offsets = [0, 128], sizes = [8, 32], strides = [1, 1]} : vector<8x384xf32> to vector<8x32xf32>
    %157 = arith.addf %155, %156 : vector<8x32xf32>
    %158 = arith.negf %157 : vector<8x32xf32>
    %159 = math.exp %158 : vector<8x32xf32>
    %cst_49 = arith.constant 1.000000e+00 : f32
    %160 = vector.broadcast %cst_49 : f32 to vector<8x32xf32>
    %161 = arith.addf %160, %159 : vector<8x32xf32>
    %162 = arith.divf %160, %161 : vector<8x32xf32>
    %163 = vector.extract_strided_slice %145 {offsets = [0, 256], sizes = [8, 32], strides = [1, 1]} : vector<8x384xf32> to vector<8x32xf32>
    %164 = vector.extract_strided_slice %146 {offsets = [0, 256], sizes = [8, 32], strides = [1, 1]} : vector<8x384xf32> to vector<8x32xf32>
    %165 = arith.addf %164, %8 : vector<8x32xf32>
    %166 = arith.mulf %154, %165 : vector<8x32xf32>
    %167 = arith.addf %163, %166 : vector<8x32xf32>
    %168 = math.tanh %167 : vector<8x32xf32>
    %cst_50 = arith.constant 1.000000e+00 : f32
    %169 = vector.broadcast %cst_50 : f32 to vector<8x32xf32>
    %170 = arith.subf %169, %162 : vector<8x32xf32>
    %171 = arith.mulf %170, %168 : vector<8x32xf32>
    %172 = arith.mulf %162, %135 : vector<8x32xf32>
    %173 = arith.addf %171, %172 : vector<8x32xf32>
    %c3_i32 = arith.constant 3 : i32
    %174 = arith.addi %10, %c3_i32 : i32
    %175 = vector.broadcast %174 : i32 to vector<8x1xi32>
    %176 = arith.cmpi sgt, %3, %175 : vector<8x1xi32>
    %177 = vector.shape_cast %176 : vector<8x1xi1> to vector<8x1xi1>
    %178 = vector.broadcast %177 : vector<8x1xi1> to vector<8x32xi1>
    %179 = arith.select %178, %173, %135 : vector<8x32xi1>, vector<8x32xf32>
    %cst_51 = arith.constant 0.000000e+00 : f32
    %180 = vector.broadcast %cst_51 : f32 to vector<8x32xf32>
    %181 = vector.shape_cast %176 : vector<8x1xi1> to vector<8x1xi1>
    %182 = vector.broadcast %181 : vector<8x1xi1> to vector<8x32xi1>
    %183 = arith.select %182, %173, %180 : vector<8x32xi1>, vector<8x32xf32>
    %c0_52 = arith.constant 0 : index
    %c3_53 = arith.constant 3 : index
    %c0_54 = arith.constant 0 : index
    %184 = vector.load %arg7[%c0_52, %c3_53, %c0_54] : memref<8x8x32xf32, #tpu.memory_space<vmem>>, vector<8x1x32xf32>
    %185 = vector.shape_cast %184 : vector<8x1x32xf32> to vector<8x32xf32>
    %186 = vector.shape_cast %183 : vector<8x32xf32> to vector<8x1x32xf32>
    tpu.vector_store %arg7[%c0_52, %c3_53, %c0_54], %186 {strides = array<i32>} : memref<8x8x32xf32, #tpu.memory_space<vmem>>, vector<8x1x32xf32>,
    %c0_55 = arith.constant 0 : index
    %c4 = arith.constant 4 : index
    %c0_56 = arith.constant 0 : index
    %187 = vector.load %arg2[%c0_55, %c4, %c0_56] : memref<8x8x40xf32, #tpu.memory_space<vmem>>, vector<8x1x40xf32>
    %188 = vector.shape_cast %187 : vector<8x1x40xf32> to vector<8x40xf32>
    %cst_57 = arith.constant dense<0.000000e+00> : vector<8x384xf32>
    %189 = tpu.matmul %188, %4, %cst_57 {dimension_numbers = #tpu.dot_dimension_numbers<[1], [0], [0], [1], [0, 0, 1, 1], [], []>} : vector<8x40xf32>, vector<40x384xf32>, vector<8x384xf32> -> vector<8x384xf32>
    %cst_58 = arith.constant dense<0.000000e+00> : vector<8x384xf32>
    %190 = tpu.matmul %179, %5, %cst_58 {dimension_numbers = #tpu.dot_dimension_numbers<[1], [0], [0], [1], [0, 0, 1, 1], [], []>} : vector<8x32xf32>, vector<32x384xf32>, vector<8x384xf32> -> vector<8x384xf32>
    %191 = vector.extract_strided_slice %189 {offsets = [0, 0], sizes = [8, 32], strides = [1, 1]} : vector<8x384xf32> to vector<8x32xf32>
    %192 = vector.extract_strided_slice %190 {offsets = [0, 0], sizes = [8, 32], strides = [1, 1]} : vector<8x384xf32> to vector<8x32xf32>
    %193 = arith.addf %191, %192 : vector<8x32xf32>
    %194 = arith.negf %193 : vector<8x32xf32>
    %195 = math.exp %194 : vector<8x32xf32>
    %cst_59 = arith.constant 1.000000e+00 : f32
    %196 = vector.broadcast %cst_59 : f32 to vector<8x32xf32>
    %197 = arith.addf %196, %195 : vector<8x32xf32>
    %198 = arith.divf %196, %197 : vector<8x32xf32>
    %199 = vector.extract_strided_slice %189 {offsets = [0, 128], sizes = [8, 32], strides = [1, 1]} : vector<8x384xf32> to vector<8x32xf32>
    %200 = vector.extract_strided_slice %190 {offsets = [0, 128], sizes = [8, 32], strides = [1, 1]} : vector<8x384xf32> to vector<8x32xf32>
    %201 = arith.addf %199, %200 : vector<8x32xf32>
    %202 = arith.negf %201 : vector<8x32xf32>
    %203 = math.exp %202 : vector<8x32xf32>
    %cst_60 = arith.constant 1.000000e+00 : f32
    %204 = vector.broadcast %cst_60 : f32 to vector<8x32xf32>
    %205 = arith.addf %204, %203 : vector<8x32xf32>
    %206 = arith.divf %204, %205 : vector<8x32xf32>
    %207 = vector.extract_strided_slice %189 {offsets = [0, 256], sizes = [8, 32], strides = [1, 1]} : vector<8x384xf32> to vector<8x32xf32>
    %208 = vector.extract_strided_slice %190 {offsets = [0, 256], sizes = [8, 32], strides = [1, 1]} : vector<8x384xf32> to vector<8x32xf32>
    %209 = arith.addf %208, %8 : vector<8x32xf32>
    %210 = arith.mulf %198, %209 : vector<8x32xf32>
    %211 = arith.addf %207, %210 : vector<8x32xf32>
    %212 = math.tanh %211 : vector<8x32xf32>
    %cst_61 = arith.constant 1.000000e+00 : f32
    %213 = vector.broadcast %cst_61 : f32 to vector<8x32xf32>
    %214 = arith.subf %213, %206 : vector<8x32xf32>
    %215 = arith.mulf %214, %212 : vector<8x32xf32>
    %216 = arith.mulf %206, %179 : vector<8x32xf32>
    %217 = arith.addf %215, %216 : vector<8x32xf32>
    %c4_i32 = arith.constant 4 : i32
    %218 = arith.addi %10, %c4_i32 : i32
    %219 = vector.broadcast %218 : i32 to vector<8x1xi32>
    %220 = arith.cmpi sgt, %3, %219 : vector<8x1xi32>
    %221 = vector.shape_cast %220 : vector<8x1xi1> to vector<8x1xi1>
    %222 = vector.broadcast %221 : vector<8x1xi1> to vector<8x32xi1>
    %223 = arith.select %222, %217, %179 : vector<8x32xi1>, vector<8x32xf32>
    %cst_62 = arith.constant 0.000000e+00 : f32
    %224 = vector.broadcast %cst_62 : f32 to vector<8x32xf32>
    %225 = vector.shape_cast %220 : vector<8x1xi1> to vector<8x1xi1>
    %226 = vector.broadcast %225 : vector<8x1xi1> to vector<8x32xi1>
    %227 = arith.select %226, %217, %224 : vector<8x32xi1>, vector<8x32xf32>
    %c0_63 = arith.constant 0 : index
    %c4_64 = arith.constant 4 : index
    %c0_65 = arith.constant 0 : index
    %228 = vector.load %arg7[%c0_63, %c4_64, %c0_65] : memref<8x8x32xf32, #tpu.memory_space<vmem>>, vector<8x1x32xf32>
    %229 = vector.shape_cast %228 : vector<8x1x32xf32> to vector<8x32xf32>
    %230 = vector.shape_cast %227 : vector<8x32xf32> to vector<8x1x32xf32>
    tpu.vector_store %arg7[%c0_63, %c4_64, %c0_65], %230 {strides = array<i32>} : memref<8x8x32xf32, #tpu.memory_space<vmem>>, vector<8x1x32xf32>,
    %c0_66 = arith.constant 0 : index
    %c5 = arith.constant 5 : index
    %c0_67 = arith.constant 0 : index
    %231 = vector.load %arg2[%c0_66, %c5, %c0_67] : memref<8x8x40xf32, #tpu.memory_space<vmem>>, vector<8x1x40xf32>
    %232 = vector.shape_cast %231 : vector<8x1x40xf32> to vector<8x40xf32>
    %cst_68 = arith.constant dense<0.000000e+00> : vector<8x384xf32>
    %233 = tpu.matmul %232, %4, %cst_68 {dimension_numbers = #tpu.dot_dimension_numbers<[1], [0], [0], [1], [0, 0, 1, 1], [], []>} : vector<8x40xf32>, vector<40x384xf32>, vector<8x384xf32> -> vector<8x384xf32>
    %cst_69 = arith.constant dense<0.000000e+00> : vector<8x384xf32>
    %234 = tpu.matmul %223, %5, %cst_69 {dimension_numbers = #tpu.dot_dimension_numbers<[1], [0], [0], [1], [0, 0, 1, 1], [], []>} : vector<8x32xf32>, vector<32x384xf32>, vector<8x384xf32> -> vector<8x384xf32>
    %235 = vector.extract_strided_slice %233 {offsets = [0, 0], sizes = [8, 32], strides = [1, 1]} : vector<8x384xf32> to vector<8x32xf32>
    %236 = vector.extract_strided_slice %234 {offsets = [0, 0], sizes = [8, 32], strides = [1, 1]} : vector<8x384xf32> to vector<8x32xf32>
    %237 = arith.addf %235, %236 : vector<8x32xf32>
    %238 = arith.negf %237 : vector<8x32xf32>
    %239 = math.exp %238 : vector<8x32xf32>
    %cst_70 = arith.constant 1.000000e+00 : f32
    %240 = vector.broadcast %cst_70 : f32 to vector<8x32xf32>
    %241 = arith.addf %240, %239 : vector<8x32xf32>
    %242 = arith.divf %240, %241 : vector<8x32xf32>
    %243 = vector.extract_strided_slice %233 {offsets = [0, 128], sizes = [8, 32], strides = [1, 1]} : vector<8x384xf32> to vector<8x32xf32>
    %244 = vector.extract_strided_slice %234 {offsets = [0, 128], sizes = [8, 32], strides = [1, 1]} : vector<8x384xf32> to vector<8x32xf32>
    %245 = arith.addf %243, %244 : vector<8x32xf32>
    %246 = arith.negf %245 : vector<8x32xf32>
    %247 = math.exp %246 : vector<8x32xf32>
    %cst_71 = arith.constant 1.000000e+00 : f32
    %248 = vector.broadcast %cst_71 : f32 to vector<8x32xf32>
    %249 = arith.addf %248, %247 : vector<8x32xf32>
    %250 = arith.divf %248, %249 : vector<8x32xf32>
    %251 = vector.extract_strided_slice %233 {offsets = [0, 256], sizes = [8, 32], strides = [1, 1]} : vector<8x384xf32> to vector<8x32xf32>
    %252 = vector.extract_strided_slice %234 {offsets = [0, 256], sizes = [8, 32], strides = [1, 1]} : vector<8x384xf32> to vector<8x32xf32>
    %253 = arith.addf %252, %8 : vector<8x32xf32>
    %254 = arith.mulf %242, %253 : vector<8x32xf32>
    %255 = arith.addf %251, %254 : vector<8x32xf32>
    %256 = math.tanh %255 : vector<8x32xf32>
    %cst_72 = arith.constant 1.000000e+00 : f32
    %257 = vector.broadcast %cst_72 : f32 to vector<8x32xf32>
    %258 = arith.subf %257, %250 : vector<8x32xf32>
    %259 = arith.mulf %258, %256 : vector<8x32xf32>
    %260 = arith.mulf %250, %223 : vector<8x32xf32>
    %261 = arith.addf %259, %260 : vector<8x32xf32>
    %c5_i32 = arith.constant 5 : i32
    %262 = arith.addi %10, %c5_i32 : i32
    %263 = vector.broadcast %262 : i32 to vector<8x1xi32>
    %264 = arith.cmpi sgt, %3, %263 : vector<8x1xi32>
    %265 = vector.shape_cast %264 : vector<8x1xi1> to vector<8x1xi1>
    %266 = vector.broadcast %265 : vector<8x1xi1> to vector<8x32xi1>
    %267 = arith.select %266, %261, %223 : vector<8x32xi1>, vector<8x32xf32>
    %cst_73 = arith.constant 0.000000e+00 : f32
    %268 = vector.broadcast %cst_73 : f32 to vector<8x32xf32>
    %269 = vector.shape_cast %264 : vector<8x1xi1> to vector<8x1xi1>
    %270 = vector.broadcast %269 : vector<8x1xi1> to vector<8x32xi1>
    %271 = arith.select %270, %261, %268 : vector<8x32xi1>, vector<8x32xf32>
    %c0_74 = arith.constant 0 : index
    %c5_75 = arith.constant 5 : index
    %c0_76 = arith.constant 0 : index
    %272 = vector.load %arg7[%c0_74, %c5_75, %c0_76] : memref<8x8x32xf32, #tpu.memory_space<vmem>>, vector<8x1x32xf32>
    %273 = vector.shape_cast %272 : vector<8x1x32xf32> to vector<8x32xf32>
    %274 = vector.shape_cast %271 : vector<8x32xf32> to vector<8x1x32xf32>
    tpu.vector_store %arg7[%c0_74, %c5_75, %c0_76], %274 {strides = array<i32>} : memref<8x8x32xf32, #tpu.memory_space<vmem>>, vector<8x1x32xf32>,
    %c0_77 = arith.constant 0 : index
    %c6 = arith.constant 6 : index
    %c0_78 = arith.constant 0 : index
    %275 = vector.load %arg2[%c0_77, %c6, %c0_78] : memref<8x8x40xf32, #tpu.memory_space<vmem>>, vector<8x1x40xf32>
    %276 = vector.shape_cast %275 : vector<8x1x40xf32> to vector<8x40xf32>
    %cst_79 = arith.constant dense<0.000000e+00> : vector<8x384xf32>
    %277 = tpu.matmul %276, %4, %cst_79 {dimension_numbers = #tpu.dot_dimension_numbers<[1], [0], [0], [1], [0, 0, 1, 1], [], []>} : vector<8x40xf32>, vector<40x384xf32>, vector<8x384xf32> -> vector<8x384xf32>
    %cst_80 = arith.constant dense<0.000000e+00> : vector<8x384xf32>
    %278 = tpu.matmul %267, %5, %cst_80 {dimension_numbers = #tpu.dot_dimension_numbers<[1], [0], [0], [1], [0, 0, 1, 1], [], []>} : vector<8x32xf32>, vector<32x384xf32>, vector<8x384xf32> -> vector<8x384xf32>
    %279 = vector.extract_strided_slice %277 {offsets = [0, 0], sizes = [8, 32], strides = [1, 1]} : vector<8x384xf32> to vector<8x32xf32>
    %280 = vector.extract_strided_slice %278 {offsets = [0, 0], sizes = [8, 32], strides = [1, 1]} : vector<8x384xf32> to vector<8x32xf32>
    %281 = arith.addf %279, %280 : vector<8x32xf32>
    %282 = arith.negf %281 : vector<8x32xf32>
    %283 = math.exp %282 : vector<8x32xf32>
    %cst_81 = arith.constant 1.000000e+00 : f32
    %284 = vector.broadcast %cst_81 : f32 to vector<8x32xf32>
    %285 = arith.addf %284, %283 : vector<8x32xf32>
    %286 = arith.divf %284, %285 : vector<8x32xf32>
    %287 = vector.extract_strided_slice %277 {offsets = [0, 128], sizes = [8, 32], strides = [1, 1]} : vector<8x384xf32> to vector<8x32xf32>
    %288 = vector.extract_strided_slice %278 {offsets = [0, 128], sizes = [8, 32], strides = [1, 1]} : vector<8x384xf32> to vector<8x32xf32>
    %289 = arith.addf %287, %288 : vector<8x32xf32>
    %290 = arith.negf %289 : vector<8x32xf32>
    %291 = math.exp %290 : vector<8x32xf32>
    %cst_82 = arith.constant 1.000000e+00 : f32
    %292 = vector.broadcast %cst_82 : f32 to vector<8x32xf32>
    %293 = arith.addf %292, %291 : vector<8x32xf32>
    %294 = arith.divf %292, %293 : vector<8x32xf32>
    %295 = vector.extract_strided_slice %277 {offsets = [0, 256], sizes = [8, 32], strides = [1, 1]} : vector<8x384xf32> to vector<8x32xf32>
    %296 = vector.extract_strided_slice %278 {offsets = [0, 256], sizes = [8, 32], strides = [1, 1]} : vector<8x384xf32> to vector<8x32xf32>
    %297 = arith.addf %296, %8 : vector<8x32xf32>
    %298 = arith.mulf %286, %297 : vector<8x32xf32>
    %299 = arith.addf %295, %298 : vector<8x32xf32>
    %300 = math.tanh %299 : vector<8x32xf32>
    %cst_83 = arith.constant 1.000000e+00 : f32
    %301 = vector.broadcast %cst_83 : f32 to vector<8x32xf32>
    %302 = arith.subf %301, %294 : vector<8x32xf32>
    %303 = arith.mulf %302, %300 : vector<8x32xf32>
    %304 = arith.mulf %294, %267 : vector<8x32xf32>
    %305 = arith.addf %303, %304 : vector<8x32xf32>
    %c6_i32 = arith.constant 6 : i32
    %306 = arith.addi %10, %c6_i32 : i32
    %307 = vector.broadcast %306 : i32 to vector<8x1xi32>
    %308 = arith.cmpi sgt, %3, %307 : vector<8x1xi32>
    %309 = vector.shape_cast %308 : vector<8x1xi1> to vector<8x1xi1>
    %310 = vector.broadcast %309 : vector<8x1xi1> to vector<8x32xi1>
    %311 = arith.select %310, %305, %267 : vector<8x32xi1>, vector<8x32xf32>
    %cst_84 = arith.constant 0.000000e+00 : f32
    %312 = vector.broadcast %cst_84 : f32 to vector<8x32xf32>
    %313 = vector.shape_cast %308 : vector<8x1xi1> to vector<8x1xi1>
    %314 = vector.broadcast %313 : vector<8x1xi1> to vector<8x32xi1>
    %315 = arith.select %314, %305, %312 : vector<8x32xi1>, vector<8x32xf32>
    %c0_85 = arith.constant 0 : index
    %c6_86 = arith.constant 6 : index
    %c0_87 = arith.constant 0 : index
    %316 = vector.load %arg7[%c0_85, %c6_86, %c0_87] : memref<8x8x32xf32, #tpu.memory_space<vmem>>, vector<8x1x32xf32>
    %317 = vector.shape_cast %316 : vector<8x1x32xf32> to vector<8x32xf32>
    %318 = vector.shape_cast %315 : vector<8x32xf32> to vector<8x1x32xf32>
    tpu.vector_store %arg7[%c0_85, %c6_86, %c0_87], %318 {strides = array<i32>} : memref<8x8x32xf32, #tpu.memory_space<vmem>>, vector<8x1x32xf32>,
    %c0_88 = arith.constant 0 : index
    %c7 = arith.constant 7 : index
    %c0_89 = arith.constant 0 : index
    %319 = vector.load %arg2[%c0_88, %c7, %c0_89] : memref<8x8x40xf32, #tpu.memory_space<vmem>>, vector<8x1x40xf32>
    %320 = vector.shape_cast %319 : vector<8x1x40xf32> to vector<8x40xf32>
    %cst_90 = arith.constant dense<0.000000e+00> : vector<8x384xf32>
    %321 = tpu.matmul %320, %4, %cst_90 {dimension_numbers = #tpu.dot_dimension_numbers<[1], [0], [0], [1], [0, 0, 1, 1], [], []>} : vector<8x40xf32>, vector<40x384xf32>, vector<8x384xf32> -> vector<8x384xf32>
    %cst_91 = arith.constant dense<0.000000e+00> : vector<8x384xf32>
    %322 = tpu.matmul %311, %5, %cst_91 {dimension_numbers = #tpu.dot_dimension_numbers<[1], [0], [0], [1], [0, 0, 1, 1], [], []>} : vector<8x32xf32>, vector<32x384xf32>, vector<8x384xf32> -> vector<8x384xf32>
    %323 = vector.extract_strided_slice %321 {offsets = [0, 0], sizes = [8, 32], strides = [1, 1]} : vector<8x384xf32> to vector<8x32xf32>
    %324 = vector.extract_strided_slice %322 {offsets = [0, 0], sizes = [8, 32], strides = [1, 1]} : vector<8x384xf32> to vector<8x32xf32>
    %325 = arith.addf %323, %324 : vector<8x32xf32>
    %326 = arith.negf %325 : vector<8x32xf32>
    %327 = math.exp %326 : vector<8x32xf32>
    %cst_92 = arith.constant 1.000000e+00 : f32
    %328 = vector.broadcast %cst_92 : f32 to vector<8x32xf32>
    %329 = arith.addf %328, %327 : vector<8x32xf32>
    %330 = arith.divf %328, %329 : vector<8x32xf32>
    %331 = vector.extract_strided_slice %321 {offsets = [0, 128], sizes = [8, 32], strides = [1, 1]} : vector<8x384xf32> to vector<8x32xf32>
    %332 = vector.extract_strided_slice %322 {offsets = [0, 128], sizes = [8, 32], strides = [1, 1]} : vector<8x384xf32> to vector<8x32xf32>
    %333 = arith.addf %331, %332 : vector<8x32xf32>
    %334 = arith.negf %333 : vector<8x32xf32>
    %335 = math.exp %334 : vector<8x32xf32>
    %cst_93 = arith.constant 1.000000e+00 : f32
    %336 = vector.broadcast %cst_93 : f32 to vector<8x32xf32>
    %337 = arith.addf %336, %335 : vector<8x32xf32>
    %338 = arith.divf %336, %337 : vector<8x32xf32>
    %339 = vector.extract_strided_slice %321 {offsets = [0, 256], sizes = [8, 32], strides = [1, 1]} : vector<8x384xf32> to vector<8x32xf32>
    %340 = vector.extract_strided_slice %322 {offsets = [0, 256], sizes = [8, 32], strides = [1, 1]} : vector<8x384xf32> to vector<8x32xf32>
    %341 = arith.addf %340, %8 : vector<8x32xf32>
    %342 = arith.mulf %330, %341 : vector<8x32xf32>
    %343 = arith.addf %339, %342 : vector<8x32xf32>
    %344 = math.tanh %343 : vector<8x32xf32>
    %cst_94 = arith.constant 1.000000e+00 : f32
    %345 = vector.broadcast %cst_94 : f32 to vector<8x32xf32>
    %346 = arith.subf %345, %338 : vector<8x32xf32>
    %347 = arith.mulf %346, %344 : vector<8x32xf32>
    %348 = arith.mulf %338, %311 : vector<8x32xf32>
    %349 = arith.addf %347, %348 : vector<8x32xf32>
    %c7_i32 = arith.constant 7 : i32
    %350 = arith.addi %10, %c7_i32 : i32
    %351 = vector.broadcast %350 : i32 to vector<8x1xi32>
    %352 = arith.cmpi sgt, %3, %351 : vector<8x1xi32>
    %353 = vector.shape_cast %352 : vector<8x1xi1> to vector<8x1xi1>
    %354 = vector.broadcast %353 : vector<8x1xi1> to vector<8x32xi1>
    %355 = arith.select %354, %349, %311 : vector<8x32xi1>, vector<8x32xf32>
    %cst_95 = arith.constant 0.000000e+00 : f32
    %356 = vector.broadcast %cst_95 : f32 to vector<8x32xf32>
    %357 = vector.shape_cast %352 : vector<8x1xi1> to vector<8x1xi1>
    %358 = vector.broadcast %357 : vector<8x1xi1> to vector<8x32xi1>
    %359 = arith.select %358, %349, %356 : vector<8x32xi1>, vector<8x32xf32>
    %c0_96 = arith.constant 0 : index
    %c7_97 = arith.constant 7 : index
    %c0_98 = arith.constant 0 : index
    %360 = vector.load %arg7[%c0_96, %c7_97, %c0_98] : memref<8x8x32xf32, #tpu.memory_space<vmem>>, vector<8x1x32xf32>
    %361 = vector.shape_cast %360 : vector<8x1x32xf32> to vector<8x32xf32>
    %362 = vector.shape_cast %359 : vector<8x32xf32> to vector<8x1x32xf32>
    tpu.vector_store %arg7[%c0_96, %c7_97, %c0_98], %362 {strides = array<i32>} : memref<8x8x32xf32, #tpu.memory_space<vmem>>, vector<8x1x32xf32>,
    %c0_99 = arith.constant 0 : index
    %c0_100 = arith.constant 0 : index
    %363 = vector.load %arg9[%c0_99, %c0_100] : memref<8x32xf32, #tpu.memory_space<vmem>>, vector<8x32xf32>
    tpu.vector_store %arg9[%c0_99, %c0_100], %355 {strides = array<i32>} : memref<8x32xf32, #tpu.memory_space<vmem>>, vector<8x32xf32>,
    %c0_101 = arith.constant 0 : index
    %c0_102 = arith.constant 0 : index
    %364 = vector.load %arg8[%c0_101, %c0_102] : memref<8x32xf32, #tpu.memory_space<vmem>>, vector<8x32xf32>
    tpu.vector_store %arg8[%c0_101, %c0_102], %355 {strides = array<i32>} : memref<8x32xf32, #tpu.memory_space<vmem>>, vector<8x32xf32>,
    return
  }
  func.func @transform_0(%arg0: i32, %arg1: i32) -> (i32, i32, i32) {
    %c0_i32 = arith.constant 0 : i32
    %c0_i32_0 = arith.constant 0 : i32
    return %arg0, %arg1, %c0_i32 : i32, i32, i32
  }
  func.func @transform_1(%arg0: i32, %arg1: i32) -> (i32, i32) {
    %c0_i32 = arith.constant 0 : i32
    %c0_i32_0 = arith.constant 0 : i32
    return %arg0, %c0_i32 : i32, i32
  }
  func.func @transform_2(%arg0: i32, %arg1: i32) -> (i32, i32) {
    %c0_i32 = arith.constant 0 : i32
    %c0_i32_0 = arith.constant 0 : i32
    %c0_i32_1 = arith.constant 0 : i32
    return %c0_i32, %c0_i32_0 : i32, i32
  }
  func.func @transform_3(%arg0: i32, %arg1: i32) -> (i32, i32) {
    %c0_i32 = arith.constant 0 : i32
    %c0_i32_0 = arith.constant 0 : i32
    %c0_i32_1 = arith.constant 0 : i32
    return %c0_i32, %c0_i32_0 : i32, i32
  }
  func.func @transform_4(%arg0: i32, %arg1: i32) -> (i32, i32) {
    %c0_i32 = arith.constant 0 : i32
    %c0_i32_0 = arith.constant 0 : i32
    %c0_i32_1 = arith.constant 0 : i32
    return %c0_i32, %c0_i32_0 : i32, i32
  }
  func.func @transform_5(%arg0: i32, %arg1: i32) -> (i32, i32, i32) {
    %c0_i32 = arith.constant 0 : i32
    %c0_i32_0 = arith.constant 0 : i32
    return %arg0, %arg1, %c0_i32 : i32, i32, i32
  }
  func.func @transform_6(%arg0: i32, %arg1: i32) -> (i32, i32) {
    %c0_i32 = arith.constant 0 : i32
    %c0_i32_0 = arith.constant 0 : i32
    return %arg0, %c0_i32 : i32, i32
  }
}

</mosaic_0001>

<bundles_post_ra>
// kernel: encoder_rnn_forward.1
= control target key start
LH: loop header
LB: loop body
LE: loop exit
PB: predicated region body
PF: predicated region fallthrough
CT: control target
= control target key end

     0   :  { %vm26_vm0 = vcmask 261120   ;;  %v2148_v3 = vmov 0.0   ;;  %vm79_vm1 = vcmask 1041409   ;;  %v2149_v13 = vmov 0   ;;  %s3342_s3 = inlined_call_operand.vmem [shape: f32[32,384], index: 3, kind: input, shape index: {}]   ;;  %s3343_s2 = inlined_call_operand.vmem [shape: f32[40,384], index: 2, kind: input, shape index: {}]   ;;  %s3344_s0 = inlined_call_operand.vmem [shape: f32[8,8,40], index: 0, kind: input, shape index: {}]   ;;  %s3345_s1 = inlined_call_operand.vmem [shape: s32[8,1], index: 1, kind: input, shape index: {}]   ;;  %s3346_s4 = inlined_call_operand.vmem [shape: f32[1,32], index: 4, kind: input, shape index: {}]   ;;  %s3347_s5 = inlined_call_operand.vmem [shape: f32[8,8,32], index: 5, kind: output, shape index: {0}]   ;;  %s3348_s6 = inlined_call_operand.vmem [shape: f32[8,32], index: 6, kind: output, shape index: {1}]  }
   0x1   :  { %v2188_v0 = vld [vmem:[%s3342_s3 + $0x48] sm:$0xff]  ;;  %v2193_v1 = vld [vmem:[%s3342_s3 + $0x30] sm:$0xff]  ;;  %v2198_v2 = vld [vmem:[%s3343_s2 + $0x60] sm:$0xff]  ;;  %27 = vst.msk [vmem:[#allocation2] sm:$0xff] %vm26_vm0, %v2148_v3  ;;  %2035 = vset.pattern.permute.xlu0 %v2149_v13  ;;  %2036 = vset.pattern.permute.xlu1 %v2149_v13  ;;  %vm82_vm2 = vcmask 1042434   ;;  %vm85_vm3 = vcmask 1043459  }
   0x2   :  { %178 = vmatpush.msra.mxu3 %v2188_v0  ;;  %113 = vmatpush.msra.mxu0 %v2198_v2  ;;  %v2206_v4 = vld [vmem:[%s3343_s2 + $0x48] sm:$0xff]  ;;  %v2211_v5 = vld [vmem:[%s3342_s3 + $0x18] sm:$0xff]  ;;  %v2216_v6 = vld [vmem:[%s3343_s2 + $0x30] sm:$0xff]  ;;  %vm88_vm4 = vcmask 1044484   ;;  %vm91_vm5 = vcmask 1045509   ;;  %vm94_vm6 = vcmask 1046534  }
   0x3   :  { %v2223_v7 = vld [vmem:[%s3342_s3] sm:$0xff]  ;;  %v2228_v8 = vld [vmem:[%s3343_s2 + $0x68] sm:$0xff]  ;;  %v2233_v9 = vld [vmem:[%s3342_s3 + $0x50] sm:$0xff]  ;;  %2037 = vset.pattern.permute.xlu2 %v2149_v13  ;;  %vm3350_vm7 = vcmask 1047559   ;;  %vm3349_vm8 = vcmask 326656  }
   0x4   :  { %179 = vmatpush.msra.mxu3 %v2193_v1  ;;  %114 = vmatpush.msra.mxu0 %v2206_v4  ;;  %v2238_v10 = vld [vmem:[%s3343_s2 + $0x18] sm:$0xff]  ;;  %v2243_v11 = vld [vmem:[%s3343_s2] sm:$0xff]  ;;  %v63_v12 = vld [vmem:[%s3344_s0 + $0x8] sm:$0x1] }
   0x5   :  { %133 = vmatpush.msra.mxu1 %v2228_v8  ;;  %v64_v14 = vld [vmem:[%s3344_s0 + $0x10] sm:$0x1]  ;;  %v65_v15 = vld [vmem:[%s3344_s0 + $0x18] sm:$0x1]  ;;  %v66_v16 = vld [vmem:[%s3344_s0 + $0x20] sm:$0x1] }
   0x6   :  { %180 = vmatpush.msra.mxu3 %v2211_v5  ;;  %115 = vmatpush.msra.mxu0 %v2216_v6  ;;  %v62_v17 = vld [vmem:[%s3344_s0] sm:$0x1]  ;;  %v67_v18 = vld [vmem:[%s3344_s0 + $0x28] sm:$0x1]  ;;  %v68_v19 = vld [vmem:[%s3344_s0 + $0x30] sm:$0x1] }
   0x7   :  { %v78_v21 = vrot.slane %v63_v12, 7  ;;  %v81_v22 = vrot.slane %v64_v14, 6  ;;  %v84_v23 = vrot.slane %v65_v15, 5  ;;  %v2279_v24 = vld [vmem:[%s3343_s2 + $0x50] sm:$0xff]  ;;  %v2286_v25 = vld [vmem:[%s3342_s3 + $0x38] sm:$0xff]  ;;  %v87_v27 = vrot.slane %v66_v16, 4 }
   0x8   :  { %181 = vmatpush.msra.mxu3 %v2223_v7  ;;  %v2273_v20 = vld [vmem:[#allocation2] sm:$0xff]  ;;  %116 = vmatpush.msra.mxu0 %v2238_v10  ;;  %v69_v26 = vld [vmem:[%s3344_s0 + $0x38] sm:$0x1]  ;;  %v90_v30 = vrot.slane %v67_v18, 3  ;;  %v2308_v32 = vld [vmem:[%s3343_s2 + $0x70] sm:$0xff]  ;;  %v93_v36 = vrot.slane %v68_v19, 2 }
   0x9   :  { %1972 = vmatmul.msk.f32.vlgmr.msra.gmra.mxu3 %vm26_vm0, %v2273_v20  ;;  %134 = vmatpush.msra.mxu1 %v2279_v24  ;;  %v2295_v28 = vld [vmem:[%s3343_s2 + $0x38] sm:$0xff]  ;;  %v80_v29 = vsel %vm79_vm1, %v78_v21, %v62_v17  ;;  %v2303_v31 = vld [vmem:[%s3343_s2 + $0x20] sm:$0xff]  ;;  %v96_v40 = vrot.slane %v69_v26, 1  ;;  %v2338_v41 = vld [vmem:[%s3343_s2 + $0x8] sm:$0xff] }
   0xa   :  { %198 = vmatpush.msrb.mxu3 %v2233_v9  ;;  %117 = vmatpush.msra.mxu0 %v2243_v11  ;;  %v2313_v33 = vld [vmem:[%s3343_s2 + $0x58] sm:$0xff]  ;;  %v2318_v34 = vld [vmem:[%s3342_s3 + $0x20] sm:$0xff]  ;;  %v83_v35 = vsel %vm82_vm2, %v81_v22, %v80_v29  ;;  %v2350_v44 = vld [vmem:[%s3342_s3 + $0x8] sm:$0xff] }
   0xb   :  { %135 = vmatpush.msra.mxu1 %v2295_v28  ;;  %153 = vmatpush.msra.mxu2 %v2308_v32  ;;  %v2326_v37 = vld [vmem:[%s3342_s3 + $0x58] sm:$0xff]  ;;  %v2331_v38 = vld [vmem:[%s3342_s3 + $0x40] sm:$0xff]  ;;  %v86_v39 = vsel %vm85_vm3, %v84_v23, %v83_v35  ;;  %v2357_v45 = vld [vmem:[%s3342_s3 + $0x28] sm:$0xff] }
   0xc   :  { %199 = vmatpush.msrb.mxu3 %v2286_v25  ;;  %218 = vmatpush.msrb.mxu0 %v2326_v37  ;;  %v2344_v42 = vld [vmem:[%s3343_s2 + $0x40] sm:$0xff]  ;;  %v89_v43 = vsel %vm88_vm4, %v87_v27, %v86_v39  ;;  %v2374_v49 = vld [vmem:[%s3343_s2 + $0x28] sm:$0xff]  ;;  %v2382_v51 = vld [vmem:[%s3342_s3 + $0x10] sm:$0xff] }
   0xd   :  { %136 = vmatpush.msra.mxu1 %v2303_v31  ;;  %154 = vmatpush.msra.mxu2 %v2313_v33  ;;  %v2362_v46 = vld [vmem:[%s3345_s1] sm:$0xff]  ;;  %v92_v47 = vsel %vm91_vm5, %v90_v30, %v89_v43  ;;  %v2391_v53 = vld [vmem:[%s3343_s2 + $0x10] sm:$0xff]  ;;  %v308_v60 = vld [vmem:[%s3344_s0 + $0x9] sm:$0x1] }
   0xe   :  { %200 = vmatpush.msrb.mxu3 %v2318_v34  ;;  %219 = vmatpush.msrb.mxu0 %v2331_v38  ;;  %vm275_vm9 = vcmp.gt.s32.totalorder %v2362_v46, 0  ;;  %v95_v48 = vsel %vm94_vm6, %v93_v36, %v92_v47  ;;  %vm512_vm10 = vcmp.gt.s32.totalorder %v2362_v46, 1  ;;  %vm1692_vm11 = vcmp.gt.s32.totalorder %v2362_v46, 6  ;;  %v309_v62 = vld [vmem:[%s3344_s0 + $0x11] sm:$0x1] }
   0xf   :  { %137 = vmatpush.msra.mxu1 %v2338_v41  ;;  %155 = vmatpush.msra.mxu2 %v2344_v42  ;;  %v98_v50 = vsel %vm3350_vm7, %v96_v40, %v95_v48  ;;  %v276_v52 = vsel %vm275_vm9, 1, %v2149_v13  ;;  %v513_v54 = vsel %vm512_vm10, 1, %v2149_v13  ;;  %v1693_v55 = vsel %vm1692_vm11, 1, %v2149_v13  ;;  %v307_v3 = vld [vmem:[%s3344_s0 + $0x1] sm:$0x1] }
  0x10   :  { %201 = vmatpush.msrb.mxu3 %v2350_v44  ;;  %220 = vmatpush.msrb.mxu0 %v2357_v45  ;;  %v323_v63 = vrot.slane %v308_v60, 7  ;;  %v310_v12 = vld [vmem:[%s3344_s0 + $0x19] sm:$0x1]  ;;  %v325_v14 = vrot.slane %v309_v62, 6  ;;  %v311_v16 = vld [vmem:[%s3344_s0 + $0x21] sm:$0x1] }
  0x11   :  { %1969 = vmatmul.msk.f32.vlgmr.msra.gmra.mxu0 %vm3349_vm8, %v98_v50  ;;  %1973 = vmatmul.msk.f32.vlgmr.msrb.gmra.mxu3 %vm26_vm0, %v2273_v20  ;;  %v327_v18 = vrot.slane %v310_v12, 5  ;;  %v312_v21 = vld [vmem:[%s3344_s0 + $0x29] sm:$0x1]  ;;  %v329_v23 = vrot.slane %v311_v16, 4  ;;  %v313_v26 = vld [vmem:[%s3344_s0 + $0x31] sm:$0x1] }
  0x12   :  { %1970 = vmatmul.msk.f32.vlgmr.msra.gmra.mxu1 %vm3349_vm8, %v98_v50  ;;  %156 = vmatpush.msra.mxu2 %v2374_v49  ;;  %v324_v17 = vsel %vm79_vm1, %v323_v63, %v307_v3  ;;  %v331_v29 = vrot.slane %v312_v21, 3  ;;  %v314_v35 = vld [vmem:[%s3344_s0 + $0x39] sm:$0x1]  ;;  %v333_v39 = vrot.slane %v313_v26, 2 }
  0x13   :  { %221 = vmatpush.msrb.mxu0 %v2382_v51  ;;  %278 = vperm.xlu0 %2035, %v276_v52   ;;  %v326_v22 = vsel %vm82_vm2, %v325_v14, %v324_v17  ;;  %v335_v43 = vrot.slane %v314_v35, 1 }
  0x14   :  { %157 = vmatpush.msra.mxu2 %v2391_v53  ;;  %350 = vmatpush.msrb.mxu1 %v2198_v2  ;;  %v328_v27 = vsel %vm85_vm3, %v327_v18, %v326_v22 }
  0x15   :  { %1971 = vmatmul.msk.f32.vlgmr.msra.gmra.mxu2 %vm3349_vm8, %v98_v50  ;;  %414 = vmatpush.msra.mxu0 %v2188_v0  ;;  %v330_v36 = vsel %vm88_vm4, %v329_v23, %v328_v27 }
  0x16   :  { %370 = vmatpush.msrb.mxu2 %v2228_v8  ;;  %351 = vmatpush.msrb.mxu1 %v2206_v4  ;;  %v332_v40 = vsel %vm91_vm5, %v331_v29, %v330_v36 }
  0x17   :  { %415 = vmatpush.msra.mxu0 %v2193_v1  ;;  %390 = vmatpush.msra.mxu3 %v2308_v32  ;;  %v334_v48 = vsel %vm94_vm6, %v333_v39, %v332_v40 }
  0x18   :  { %371 = vmatpush.msrb.mxu2 %v2279_v24  ;;  %352 = vmatpush.msrb.mxu1 %v2216_v6  ;;  %v336_v52 = vsel %vm3350_vm7, %v335_v43, %v334_v48 }
  0x19   :  { %1974 = vmatmul.msk.f32.vlgmr.msrb.gmra.mxu0 %vm26_vm0, %v2273_v20  ;;  %391 = vmatpush.msra.mxu3 %v2313_v33 }
  0x1a   :  { %372 = vmatpush.msrb.mxu2 %v2295_v28  ;;  %353 = vmatpush.msrb.mxu1 %v2238_v10 }
  0x1b   :  { %515 = vperm.xlu0 %2035, %v513_v54   ;;  %416 = vmatpush.msra.mxu0 %v2211_v5 }
  0x1c   :  { %373 = vmatpush.msrb.mxu2 %v2303_v31  ;;  %354 = vmatpush.msrb.mxu1 %v2243_v11 }
  0x1d   :  { %417 = vmatpush.msra.mxu0 %v2223_v7  ;;  %392 = vmatpush.msra.mxu3 %v2344_v42 }
  0x1e   :  { %434 = vmatpush.msra.mxu1 %v2233_v9  ;;  %374 = vmatpush.msrb.mxu2 %v2338_v41 }
  0x1f   :  { %393 = vmatpush.msra.mxu3 %v2374_v49  ;;  %586 = vmatpush.msrb.mxu0 %v2198_v2 }
  0x20   :  { %454 = vmatpush.msra.mxu2 %v2326_v37  ;;  %435 = vmatpush.msra.mxu1 %v2286_v25 }
  0x21   :  { %394 = vmatpush.msra.mxu3 %v2391_v53  ;;  %587 = vmatpush.msrb.mxu0 %v2206_v4 }
  0x22   :  { %455 = vmatpush.msra.mxu2 %v2331_v38  ;;  %436 = vmatpush.msra.mxu1 %v2318_v34 }
  0x23   :  { %1695 = vperm.xlu0 %2035, %v1693_v55   ;;  %606 = vmatpush.msrb.mxu3 %v2228_v8 }
  0x24   :  { %456 = vmatpush.msra.mxu2 %v2357_v45  ;;  %437 = vmatpush.msra.mxu1 %v2350_v44 }
  0x25   :  { %588 = vmatpush.msrb.mxu0 %v2216_v6  ;;  %607 = vmatpush.msrb.mxu3 %v2279_v24 }
  0x26   :  { %457 = vmatpush.msra.mxu2 %v2382_v51  ;;  %1977 = vmatmul.msk.f32.vlgmr.msrb.gmra.mxu1 %vm3349_vm8, %v336_v52 }
  0x27   :  { %589 = vmatpush.msrb.mxu0 %v2238_v10  ;;  %608 = vmatpush.msrb.mxu3 %v2295_v28 }
  0x28   :  { %1978 = vmatmul.msk.f32.vlgmr.msrb.gmra.mxu2 %vm3349_vm8, %v336_v52  ;;  %1979 = vmatmul.msk.f32.vlgmr.msra.gmra.mxu3 %vm3349_vm8, %v336_v52 }
  0x29   :  { %590 = vmatpush.msrb.mxu0 %v2243_v11  ;;  %609 = vmatpush.msrb.mxu3 %v2303_v31 }
  0x2a   :  { %650 = vmatpush.msrb.mxu2 %v2188_v0  ;;  %626 = vmatpush.msrb.mxu1 %v2308_v32 }
  0x2b   :  { %610 = vmatpush.msrb.mxu3 %v2338_v41 }
  0x2c   :  { %651 = vmatpush.msrb.mxu2 %v2193_v1  ;;  %627 = vmatpush.msrb.mxu1 %v2313_v33 }
  0x2d   :  { %822 = vmatpush.msra.mxu3 %v2198_v2 }
  0x2e   :  { %652 = vmatpush.msrb.mxu2 %v2211_v5  ;;  %628 = vmatpush.msrb.mxu1 %v2344_v42 }
  0x2f   :  { %823 = vmatpush.msra.mxu3 %v2206_v4 }
  0x30   :  { %653 = vmatpush.msrb.mxu2 %v2223_v7  ;;  %629 = vmatpush.msrb.mxu1 %v2374_v49 }
  0x31   :  { %824 = vmatpush.msra.mxu3 %v2216_v6 }
  0x32   :  { %630 = vmatpush.msrb.mxu1 %v2391_v53 }
  0x33   :  { %825 = vmatpush.msra.mxu3 %v2238_v10 }
  0x35   :  { %826 = vmatpush.msra.mxu3 %v2243_v11 }
  0x8c   :  { %v183_v56 = vpop.f32.mrf.mxu3 }
  0x8e   :  { %v119_v57 = vpop.f32.mrf.mxu0 }
  0x8f   :  { %v226_v58 = vadd.f32 %v183_v56, %v119_v57  ;;  %v139_v61 = vpop.f32.mrf.mxu1 }
  0x91   :  { %v1975_v59 = vmul.f32 -1.442695, %v226_v58  ;;  %v2490_v58 = vld [vmem:[%s3346_s4] ss:$0 sm:$0xff] }
  0x93   :  { %2039 = vpow2.f32 %v1975_v59 }
  0x94   :  { %v203_v15 = vpop.f32.mrf.mxu3 }
  0x95   :  { %v246_v19 = vadd.f32 %v203_v15, %v139_v61 }
  0x96   :  { %v223_v60 = vpop.f32.mrf.mxu0 }
  0x97   :  { %v1976_v30 = vmul.f32 -1.442695, %v246_v19  ;;  %v266_v14 = vadd.f32 %v2490_v58, %v223_v60 }
  0x98   :  { %v159_v21 = vpop.f32.mrf.mxu2 }
  0x99   :  { %v2040_v47 = vpop.eup %2039  ;;  %2041 = vpow2.f32 %v1976_v30 }
  0x9a   :  { %v230_v50 = vadd.f32 1.0, %v2040_v47  ;;  %v279_v47 = vpop.permute.xlu0 %278 }
  0x9c   :  { %2043 = vrcp.f32 %v230_v50  ;;  %v242_v61 = vand.u32 2147483648, %v230_v50  ;;  %v240_v63 = vand.u32 2147483647, %v230_v50  ;;  %vm236_vm13 = vweird.f32 %v230_v50 }
  0x9e   :  { %v243_v16 = vor.u32 1.1754944e-38, %v242_v61  ;;  %vm241_vm15 = vcmp.eq.f32.partialorder %v240_v63, 8.507059e+37 }
  0x9f   :  { %v2042_v54 = vpop.eup %2041 }
  0xa0   :  { %v250_v55 = vadd.f32 1.0, %v2042_v54 }
  0xa2   :  { %v2044_v56 = vpop.eup %2043  ;;  %2045 = vrcp.f32 %v250_v55  ;;  %v262_v19 = vand.u32 2147483648, %v250_v55  ;;  %v260_v26 = vand.u32 2147483647, %v250_v55  ;;  %vm256_vm10 = vweird.f32 %v250_v55 }
  0xa3   :  { %v232_v57 = vmul.f32 %v2044_v56, %v230_v50  ;;  %vm237_vm12 = vweird.f32 %v2044_v56  ;;  %v356_v63 = vpop.f32.mrf.mxu1 }
  0xa4   :  { %vm238_vm14 = vmor %vm236_vm13, %vm237_vm12  ;;  %v263_v35 = vor.u32 1.1754944e-38, %v262_v19  ;;  %vm261_vm8 = vcmp.eq.f32.partialorder %v260_v26, 8.507059e+37  ;;  %vm280_vm12 = vcmp.eq.s32.totalorder %v279_v47, 1  ;;  %vm298_vm13 = vcmask 253952   ;;  %v544_v19 = vld [vmem:[%s3344_s0 + $0xa] sm:$0x1] }
  0xa5   :  { %v233_v59 = vsub.f32 1.0, %v232_v57  ;;  %v546_v26 = vld [vmem:[%s3344_s0 + $0x1a] sm:$0x1] }
  0xa7   :  { %v234_v62 = vmul.f32 %v2044_v56, %v233_v59 }
  0xa8   :  { %v2046_v3 = vpop.eup %2045 }
  0xa9   :  { %v252_v12 = vmul.f32 %v2046_v3, %v250_v55  ;;  %v235_v15 = vadd.f32 %v2044_v56, %v234_v62  ;;  %vm257_vm9 = vweird.f32 %v2046_v3 }
  0xaa   :  { %vm258_vm11 = vmor %vm256_vm10, %vm257_vm9  ;;  %vm748_vm9 = vcmp.gt.s32.totalorder %v2362_v46, 2 }
  0xab   :  { %v253_v17 = vsub.f32 1.0, %v252_v12  ;;  %v239_v18 = vsel %vm238_vm14, %v2044_v56, %v235_v15 }
  0xac   :  { %v244_v22 = vsel %vm241_vm15, %v243_v16, %v239_v18 }
  0xad   :  { %v254_v23 = vmul.f32 %v2046_v3, %v253_v17  ;;  %v267_v27 = vmul.f32 %v266_v14, %v244_v22  ;;  %v559_v22 = vrot.slane %v544_v19, 7  ;;  %v749_v19 = vsel %vm748_vm9, 1, %v2149_v13 }
  0xae   :  { %751 = vperm.xlu1 %2036, %v749_v19  }
  0xaf   :  { %v255_v29 = vadd.f32 %v2046_v3, %v254_v23  ;;  %v268_v30 = vadd.f32 %v267_v27, %v159_v21  ;;  %v545_v21 = vld [vmem:[%s3344_s0 + $0x12] sm:$0x1]  ;;  %v543_v23 = vld [vmem:[%s3344_s0 + $0x2] sm:$0x1] }
  0xb0   :  { %v561_v27 = vrot.slane %v545_v21, 6 }
  0xb1   :  { %v259_v36 = vsel %vm258_vm11, %v2046_v3, %v255_v29  ;;  %2047 = vtanh.f32 %v268_v30  ;;  %v376_v3 = vpop.f32.mrf.mxu2  ;;  %v547_v29 = vld [vmem:[%s3344_s0 + $0x22] sm:$0x1]  ;;  %v560_v30 = vsel %vm79_vm1, %v559_v22, %v543_v23 }
  0xb2   :  { %v264_v39 = vsel %vm261_vm8, %v263_v35, %v259_v36  ;;  %v563_v35 = vrot.slane %v546_v26, 5  ;;  %v548_v36 = vld [vmem:[%s3344_s0 + $0x2a] sm:$0x1]  ;;  %vm3351_vm8 = vcmask 326656  }
  0xb3   :  { %v270_v40 = vsub.f32 1.0, %v264_v39  ;;  %v272_v50 = vmul.f32 %v264_v39, %v2273_v20  ;;  %v562_v39 = vsel %vm82_vm2, %v561_v27, %v560_v30  ;;  %vm3352_vm14 = vmmov %vm3351_vm8 }
  0xb4   :  { %v564_v47 = vsel %vm85_vm3, %v563_v35, %v562_v39  ;;  %vm3353_vm15 = vmmov %vm3351_vm8 }
  0xb7   :  { %v2048_v43 = vpop.eup %2047 }
  0xb8   :  { %v271_v48 = vmul.f32 %v2048_v43, %v270_v40  ;;  %v565_v40 = vrot.slane %v547_v29, 4  ;;  %v549_v43 = vld [vmem:[%s3344_s0 + $0x32] sm:$0x1] }
  0xba   :  { %v273_v52 = vadd.f32 %v272_v50, %v271_v48  ;;  %v567_v48 = vrot.slane %v548_v36, 3  ;;  %v550_v50 = vld [vmem:[%s3344_s0 + $0x3a] sm:$0x1]  ;;  %v396_v36 = vpop.f32.mrf.mxu3 }
  0xbc   :  { %v282_v54 = vsel %vm280_vm12, %v273_v52, 0.0  ;;  %v2497_v55 = vsel %vm280_vm12, %v273_v52, %v2273_v20  ;;  %v566_v52 = vsel %vm88_vm4, %v565_v40, %v564_v47  ;;  %vm984_vm12 = vcmp.gt.s32.totalorder %v2362_v46, 3 }
  0xbd   :  { %v284_v56 = vrot.slane %v282_v54, 1  ;;  %v285_v57 = vrot.slane %v282_v54, 2  ;;  %v286_v59 = vrot.slane %v282_v54, 3  ;;  %299 = vst.msk [vmem:[%s3347_s5] sm:$0x1] %vm298_vm13, %v282_v54  ;;  %1980 = vmatmul.msk.f32.vlgmr.msra.gmra.mxu0 %vm26_vm0, %v2497_v55  ;;  %1981 = vmatmul.msk.f32.vlgmr.msra.gmra.mxu1 %vm26_vm0, %v2497_v55  ;;  %v287_v60 = vrot.slane %v282_v54, 4 }
  0xbe   :  { %1982 = vmatmul.msk.f32.vlgmr.msra.gmra.mxu2 %vm26_vm0, %v2497_v55  ;;  %670 = vmatpush.msra.mxu0 %v2233_v9  ;;  %v288_v20 = vrot.slane %v282_v54, 5  ;;  %v289_v61 = vrot.slane %v282_v54, 6  ;;  %v290_v62 = vrot.slane %v282_v54, 7  ;;  %v569_v54 = vrot.slane %v549_v43, 2 }
  0xbf   :  { %300 = vst.msk [vmem:[%s3347_s5 + $0x8] sm:$0x1] %vm298_vm13, %v284_v56  ;;  %690 = vmatpush.msra.mxu2 %v2326_v37  ;;  %842 = vmatpush.msra.mxu1 %v2228_v8  ;;  %v568_v56 = vsel %vm91_vm5, %v567_v48, %v566_v52  ;;  %v985_v43 = vsel %vm984_vm12, 1, %v2149_v13 }
  0xc0   :  { %301 = vst.msk [vmem:[%s3347_s5 + $0x10] sm:$0x1] %vm298_vm13, %v285_v57  ;;  %671 = vmatpush.msra.mxu0 %v2286_v25  ;;  %v571_v57 = vrot.slane %v550_v50, 1  ;;  %987 = vperm.xlu1 %2036, %v985_v43  }
  0xc1   :  { %302 = vst.msk [vmem:[%s3347_s5 + $0x18] sm:$0x1] %vm298_vm13, %v286_v59  ;;  %691 = vmatpush.msra.mxu2 %v2331_v38  ;;  %843 = vmatpush.msra.mxu1 %v2279_v24 }
  0xc2   :  { %303 = vst.msk [vmem:[%s3347_s5 + $0x20] sm:$0x1] %vm298_vm13, %v287_v60  ;;  %672 = vmatpush.msra.mxu0 %v2318_v34  ;;  %v570_v60 = vsel %vm94_vm6, %v569_v54, %v568_v56 }
  0xc3   :  { %304 = vst.msk [vmem:[%s3347_s5 + $0x28] sm:$0x1] %vm298_vm13, %v288_v20  ;;  %692 = vmatpush.msra.mxu2 %v2357_v45  ;;  %844 = vmatpush.msra.mxu1 %v2295_v28 }
  0xc4   :  { %305 = vst.msk [vmem:[%s3347_s5 + $0x30] sm:$0x1] %vm298_vm13, %v289_v61  ;;  %673 = vmatpush.msra.mxu0 %v2350_v44 }
  0xc5   :  { %306 = vst.msk [vmem:[%s3347_s5 + $0x38] sm:$0x1] %vm298_vm13, %v290_v62  ;;  %693 = vmatpush.msra.mxu2 %v2382_v51  ;;  %845 = vmatpush.msra.mxu1 %v2303_v31  ;;  %v572_v62 = vsel %vm3350_vm7, %v571_v57, %v570_v60 }
  0xc6   :  { %1985 = vmatmul.msk.f32.vlgmr.msrb.gmra.mxu0 %vm3351_vm8, %v572_v62  ;;  %1986 = vmatmul.msk.f32.vlgmr.msrb.gmra.mxu3 %vm3352_vm14, %v572_v62 }
  0xc7   :  { %846 = vmatpush.msra.mxu1 %v2338_v41  ;;  %906 = vmatpush.msrb.mxu3 %v2233_v9 }
  0xc8   :  { %1987 = vmatmul.msk.f32.vlgmr.msrb.gmra.mxu1 %vm3353_vm15, %v572_v62  ;;  %862 = vmatpush.msrb.mxu0 %v2308_v32 }
  0xc9   :  { %926 = vmatpush.msrb.mxu1 %v2326_v37  ;;  %907 = vmatpush.msrb.mxu3 %v2286_v25 }
  0xca   :  { %863 = vmatpush.msrb.mxu0 %v2313_v33 }
  0xcb   :  { %927 = vmatpush.msrb.mxu1 %v2331_v38  ;;  %908 = vmatpush.msrb.mxu3 %v2318_v34 }
  0xcc   :  { %864 = vmatpush.msrb.mxu0 %v2344_v42 }
  0xcd   :  { %928 = vmatpush.msrb.mxu1 %v2357_v45  ;;  %909 = vmatpush.msrb.mxu3 %v2350_v44 }
  0xce   :  { %865 = vmatpush.msrb.mxu0 %v2374_v49 }
  0xcf   :  { %929 = vmatpush.msrb.mxu1 %v2382_v51 }
  0xd0   :  { %866 = vmatpush.msrb.mxu0 %v2391_v53 }
 0x13a   :  { %v419_v12 = vpop.f32.mrf.mxu0  ;;  %v439_v14 = vpop.f32.mrf.mxu1 }
 0x13b   :  { %v462_v15 = vadd.f32 %v419_v12, %v356_v63  ;;  %v482_v16 = vadd.f32 %v439_v14, %v376_v3 }
 0x13d   :  { %v1983_v17 = vmul.f32 -1.442695, %v462_v15  ;;  %v1984_v18 = vmul.f32 -1.442695, %v482_v16 }
 0x13f   :  { %2049 = vpow2.f32 %v1983_v17 }
 0x140   :  { %2051 = vpow2.f32 %v1984_v18 }
 0x141   :  { %v459_v26 = vpop.f32.mrf.mxu2 }
 0x142   :  { %v502_v30 = vadd.f32 %v2490_v58, %v459_v26 }
 0x145   :  { %v2050_v59 = vpop.eup %2049 }
 0x146   :  { %v2052_v20 = vpop.eup %2051  ;;  %v466_v61 = vadd.f32 1.0, %v2050_v59 }
 0x147   :  { %v486_v63 = vadd.f32 1.0, %v2052_v20 }
 0x148   :  { %2053 = vrcp.f32 %v466_v61  ;;  %v478_v18 = vand.u32 2147483648, %v466_v61  ;;  %v476_v22 = vand.u32 2147483647, %v466_v61  ;;  %vm472_vm11 = vweird.f32 %v466_v61 }
 0x149   :  { %2055 = vrcp.f32 %v486_v63  ;;  %v498_v47 = vand.u32 2147483648, %v486_v63  ;;  %vm492_vm9 = vweird.f32 %v486_v63  ;;  %v496_v50 = vand.u32 2147483647, %v486_v63 }
 0x14a   :  { %v479_v29 = vor.u32 1.1754944e-38, %v478_v18  ;;  %vm477_vm14 = vcmp.eq.f32.partialorder %v476_v22, 8.507059e+37 }
 0x14b   :  { %v499_v56 = vor.u32 1.1754944e-38, %v498_v47 }
 0x14e   :  { %v2054_v3 = vpop.eup %2053 }
 0x14f   :  { %v2056_v12 = vpop.eup %2055  ;;  %v468_v14 = vmul.f32 %v2054_v3, %v466_v61  ;;  %vm473_vm10 = vweird.f32 %v2054_v3 }
 0x150   :  { %v488_v15 = vmul.f32 %v2056_v12, %v486_v63  ;;  %vm474_vm8 = vmor %vm472_vm11, %vm473_vm10  ;;  %vm493_vm15 = vweird.f32 %v2056_v12  ;;  %vm1928_vm10 = vcmp.gt.s32.totalorder %v2362_v46, 7  ;;  %vm497_vm11 = vcmp.eq.f32.partialorder %v496_v50, 8.507059e+37 }
 0x151   :  { %v469_v16 = vsub.f32 1.0, %v468_v14  ;;  %vm494_vm7 = vmor %vm492_vm9, %vm493_vm15  ;;  %v1929_v59 = vsel %vm1928_vm10, 1, %v2149_v13 }
 0x152   :  { %v489_v17 = vsub.f32 1.0, %v488_v15  ;;  %1931 = vperm.xlu1 %2036, %v1929_v59  }
 0x153   :  { %v470_v21 = vmul.f32 %v2054_v3, %v469_v16 }
 0x154   :  { %v490_v23 = vmul.f32 %v2056_v12, %v489_v17 }
 0x155   :  { %v471_v27 = vadd.f32 %v2054_v3, %v470_v21  ;;  %v612_v21 = vpop.f32.mrf.mxu3 }
 0x156   :  { %v491_v40 = vadd.f32 %v2056_v12, %v490_v23 }
 0x157   :  { %v475_v35 = vsel %vm474_vm8, %v2054_v3, %v471_v27  ;;  %v516_v3 = vpop.permute.xlu0 %515  ;;  %vm3355_vm8 = vcmask 326656  }
 0x158   :  { %v480_v39 = vsel %vm477_vm14, %v479_v29, %v475_v35  ;;  %v495_v54 = vsel %vm494_vm7, %v2056_v12, %v491_v40  ;;  %vm517_vm12 = vcmp.eq.s32.totalorder %v516_v3, 1  ;;  %v782_v35 = vld [vmem:[%s3344_s0 + $0x1b] sm:$0x1]  ;;  %v783_v40 = vld [vmem:[%s3344_s0 + $0x23] sm:$0x1]  ;;  %vm3354_vm7 = vcmask 1047559   ;;  %vm3356_vm14 = vmmov %vm3355_vm8 }
 0x159   :  { %v503_v48 = vmul.f32 %v502_v30, %v480_v39  ;;  %v500_v57 = vsel %vm497_vm11, %v499_v56, %v495_v54  ;;  %v799_v47 = vrot.slane %v782_v35, 5  ;;  %v785_v54 = vld [vmem:[%s3344_s0 + $0x33] sm:$0x1]  ;;  %v786_v56 = vld [vmem:[%s3344_s0 + $0x3b] sm:$0x1]  ;;  %vm3357_vm15 = vmmov %vm3355_vm8 }
 0x15a   :  { %v506_v60 = vsub.f32 1.0, %v500_v57  ;;  %v508_v62 = vmul.f32 %v500_v57, %v2497_v55 }
 0x15b   :  { %v504_v52 = vadd.f32 %v503_v48, %v396_v36  ;;  %v784_v48 = vld [vmem:[%s3344_s0 + $0x2b] sm:$0x1] }
 0x15c   :  { %v803_v59 = vrot.slane %v784_v48, 3 }
 0x15d   :  { %2057 = vtanh.f32 %v504_v52  ;;  %v801_v52 = vrot.slane %v783_v40, 4 }
 0x163   :  { %v2058_v20 = vpop.eup %2057 }
 0x164   :  { %v507_v61 = vmul.f32 %v2058_v20, %v506_v60  ;;  %v805_v60 = vrot.slane %v785_v54, 2 }
 0x166   :  { %v509_v63 = vadd.f32 %v508_v62, %v507_v61  ;;  %v807_v61 = vrot.slane %v786_v56, 1  ;;  %v2758_v56 = vld [vmem:[%s3343_s2 + $0x48] sm:$0xff] }
 0x168   :  { %v519_v14 = vsel %vm517_vm12, %v509_v63, 0.0  ;;  %v2606_v12 = vsel %vm517_vm12, %v509_v63, %v2497_v55 }
 0x169   :  { %v521_v15 = vrot.slane %v519_v14, 1  ;;  %v522_v16 = vrot.slane %v519_v14, 2  ;;  %v523_v46 = vrot.slane %v519_v14, 3  ;;  %535 = vst.msk [vmem:[%s3347_s5 + $0x1] sm:$0x1] %vm298_vm13, %v519_v14  ;;  %1988 = vmatmul.msk.f32.vlgmr.msrb.gmra.mxu2 %vm26_vm0, %v2606_v12  ;;  %1989 = vmatmul.msk.f32.vlgmr.msra.gmra.mxu0 %vm26_vm0, %v2606_v12  ;;  %v524_v17 = vrot.slane %v519_v14, 4 }
 0x16a   :  { %886 = vmatpush.msrb.mxu2 %v2188_v0  ;;  %1078 = vmatpush.msra.mxu0 %v2228_v8  ;;  %v525_v55 = vrot.slane %v519_v14, 5  ;;  %v526_v18 = vrot.slane %v519_v14, 6  ;;  %v527_v19 = vrot.slane %v519_v14, 7  ;;  %v592_v8 = vpop.f32.mrf.mxu0 }
 0x16b   :  { %536 = vst.msk [vmem:[%s3347_s5 + $0x9] sm:$0x1] %vm298_vm13, %v521_v15 }
 0x16c   :  { %537 = vst.msk [vmem:[%s3347_s5 + $0x11] sm:$0x1] %vm298_vm13, %v522_v16  ;;  %887 = vmatpush.msrb.mxu2 %v2193_v1  ;;  %1079 = vmatpush.msra.mxu0 %v2279_v24 }
 0x16d   :  { %538 = vst.msk [vmem:[%s3347_s5 + $0x19] sm:$0x1] %vm298_vm13, %v523_v46 }
 0x16e   :  { %539 = vst.msk [vmem:[%s3347_s5 + $0x21] sm:$0x1] %vm298_vm13, %v524_v17  ;;  %888 = vmatpush.msrb.mxu2 %v2211_v5  ;;  %1080 = vmatpush.msra.mxu0 %v2295_v28 }
 0x16f   :  { %540 = vst.msk [vmem:[%s3347_s5 + $0x29] sm:$0x1] %vm298_vm13, %v525_v55 }
 0x170   :  { %541 = vst.msk [vmem:[%s3347_s5 + $0x31] sm:$0x1] %vm298_vm13, %v526_v18  ;;  %889 = vmatpush.msrb.mxu2 %v2223_v7  ;;  %1081 = vmatpush.msra.mxu0 %v2303_v31 }
 0x171   :  { %542 = vst.msk [vmem:[%s3347_s5 + $0x39] sm:$0x1] %vm298_vm13, %v527_v19  ;;  %1990 = vmatmul.msk.f32.vlgmr.msra.gmra.mxu2 %vm26_vm0, %v2606_v12  ;;  %v632_v19 = vpop.f32.mrf.mxu1 }
 0x172   :  { %1058 = vmatpush.msra.mxu2 %v2198_v2  ;;  %1082 = vmatpush.msra.mxu0 %v2338_v41  ;;  %v780_v2 = vld [vmem:[%s3344_s0 + $0xb] sm:$0x1] }
 0x174   :  { %1059 = vmatpush.msra.mxu2 %v2206_v4  ;;  %v781_v4 = vld [vmem:[%s3344_s0 + $0x13] sm:$0x1] }
 0x175   :  { %v797_v36 = vrot.slane %v781_v4, 6 }
 0x176   :  { %1060 = vmatpush.msra.mxu2 %v2216_v6  ;;  %v795_v6 = vrot.slane %v780_v2, 7 }
 0x178   :  { %1061 = vmatpush.msra.mxu2 %v2238_v10 }
 0x17a   :  { %1062 = vmatpush.msra.mxu2 %v2243_v11  ;;  %v779_v11 = vld [vmem:[%s3344_s0 + $0x3] sm:$0x1] }
 0x17b   :  { %v796_v43 = vsel %vm79_vm1, %v795_v6, %v779_v11  ;;  %v752_v6 = vpop.permute.xlu1 %751 }
 0x17c   :  { %v798_v50 = vsel %vm82_vm2, %v797_v36, %v796_v43 }
 0x17d   :  { %v800_v57 = vsel %vm85_vm3, %v799_v47, %v798_v50  ;;  %v2737_v50 = vld [vmem:[%s3343_s2 + $0x60] sm:$0xff] }
 0x17e   :  { %v802_v20 = vsel %vm88_vm4, %v801_v52, %v800_v57  ;;  %v2743_v52 = vld [vmem:[%s3343_s2 + $0x68] sm:$0xff] }
 0x17f   :  { %v804_v3 = vsel %vm91_vm5, %v803_v59, %v802_v20 }
 0x180   :  { %v806_v14 = vsel %vm94_vm6, %v805_v60, %v804_v3  ;;  %v1017_v3 = vld [vmem:[%s3344_s0 + $0x14] sm:$0x1] }
 0x181   :  { %v808_v15 = vsel %vm3354_vm7, %v807_v61, %v806_v14  ;;  %v1018_v14 = vld [vmem:[%s3344_s0 + $0x1c] sm:$0x1] }
 0x182   :  { %1993 = vmatmul.msk.f32.vlgmr.msra.gmra.mxu3 %vm3355_vm8, %v808_v15  ;;  %1994 = vmatmul.msk.f32.vlgmr.msra.gmra.mxu1 %vm3356_vm14, %v808_v15 }
 0x183   :  { %1995 = vmatmul.msk.f32.vlgmr.msrb.gmra.mxu0 %vm3357_vm15, %v808_v15  ;;  %1122 = vmatpush.msra.mxu1 %v2188_v0  ;;  %v1033_v15 = vrot.slane %v1017_v3, 6 }
 0x184   :  { %1162 = vmatpush.msrb.mxu0 %v2326_v37  ;;  %1098 = vmatpush.msra.mxu3 %v2308_v32 }
 0x185   :  { %1123 = vmatpush.msra.mxu1 %v2193_v1 }
 0x186   :  { %1163 = vmatpush.msrb.mxu0 %v2331_v38  ;;  %1099 = vmatpush.msra.mxu3 %v2313_v33 }
 0x187   :  { %1124 = vmatpush.msra.mxu1 %v2211_v5 }
 0x188   :  { %1164 = vmatpush.msrb.mxu0 %v2357_v45  ;;  %1100 = vmatpush.msra.mxu3 %v2344_v42 }
 0x189   :  { %1125 = vmatpush.msra.mxu1 %v2223_v7 }
 0x18a   :  { %1165 = vmatpush.msrb.mxu0 %v2382_v51  ;;  %1101 = vmatpush.msra.mxu3 %v2374_v49 }
 0x18c   :  { %1102 = vmatpush.msra.mxu3 %v2391_v53 }
 0x1e6   :  { %v675_v22 = vpop.f32.mrf.mxu0 }
 0x1e7   :  { %v718_v23 = vadd.f32 %v675_v22, %v612_v21 }
 0x1e9   :  { %v1992_v26 = vmul.f32 -1.442695, %v718_v23 }
 0x1eb   :  { %2059 = vpow2.f32 %v1992_v26 }
 0x1ec   :  { %v655_v27 = vpop.f32.mrf.mxu2 }
 0x1ed   :  { %v698_v29 = vadd.f32 %v655_v27, %v592_v8 }
 0x1ef   :  { %v1991_v30 = vmul.f32 -1.442695, %v698_v29 }
 0x1f1   :  { %v2060_v10 = vpop.eup %2059  ;;  %2061 = vpow2.f32 %v1991_v30 }
 0x1f2   :  { %v2672_v39 = vadd.f32 1.0, %v2060_v10 }
 0x1f4   :  { %2063 = vrcp.f32 %v2672_v39  ;;  %v695_v55 = vpop.f32.mrf.mxu2  ;;  %v734_v21 = vand.u32 2147483648, %v2672_v39  ;;  %vm728_vm8 = vweird.f32 %v2672_v39  ;;  %v732_v23 = vand.u32 2147483647, %v2672_v39 }
 0x1f5   :  { %v738_v7 = vadd.f32 %v2490_v58, %v695_v55 }
 0x1f6   :  { %v735_v29 = vor.u32 1.1754944e-38, %v734_v21  ;;  %vm733_vm15 = vcmp.eq.f32.partialorder %v732_v23, 8.507059e+37  ;;  %v2840_v23 = vld [vmem:[%s3342_s3 + $0x48] sm:$0xff] }
 0x1f7   :  { %v2062_v62 = vpop.eup %2061 }
 0x1f8   :  { %v702_v63 = vadd.f32 1.0, %v2062_v62 }
 0x1fa   :  { %2065 = vrcp.f32 %v702_v63  ;;  %v2064_v16 = vpop.eup %2063  ;;  %v714_v32 = vand.u32 2147483648, %v702_v63  ;;  %v712_v5 = vand.u32 2147483647, %v702_v63  ;;  %vm708_vm10 = vweird.f32 %v702_v63 }
 0x1fb   :  { %v724_v46 = vmul.f32 %v2064_v16, %v2672_v39  ;;  %vm729_vm7 = vweird.f32 %v2064_v16 }
 0x1fc   :  { %v715_v42 = vor.u32 1.1754944e-38, %v714_v32  ;;  %vm713_vm12 = vcmp.eq.f32.partialorder %v712_v5, 8.507059e+37  ;;  %vm730_vm14 = vmor %vm728_vm8, %vm729_vm7  ;;  %v1021_v32 = vld [vmem:[%s3344_s0 + $0x34] sm:$0x1] }
 0x1fd   :  { %v725_v37 = vsub.f32 1.0, %v724_v46 }
 0x1ff   :  { %v726_v38 = vmul.f32 %v2064_v16, %v725_v37 }
 0x200   :  { %v2066_v17 = vpop.eup %2065 }
 0x201   :  { %v704_v0 = vmul.f32 %v2066_v17, %v702_v63  ;;  %vm709_vm9 = vweird.f32 %v2066_v17  ;;  %v727_v49 = vadd.f32 %v2064_v16, %v726_v38  ;;  %v1022_v38 = vld [vmem:[%s3344_s0 + $0x3c] sm:$0x1] }
 0x202   :  { %vm710_vm11 = vmor %vm708_vm10, %vm709_vm9  ;;  %vm753_vm9 = vcmp.eq.s32.totalorder %v752_v6, 1  ;;  %vm3358_vm10 = vcmask 1047559   ;;  %v2883_v6 = vld [vmem:[%s3342_s3 + $0x28] sm:$0xff] }
 0x203   :  { %v705_v1 = vsub.f32 1.0, %v704_v0  ;;  %v731_v27 = vsel %vm730_vm14, %v2064_v16, %v727_v49  ;;  %v1019_v16 = vld [vmem:[%s3344_s0 + $0x24] sm:$0x1]  ;;  %v1020_v0 = vld [vmem:[%s3344_s0 + $0x2c] sm:$0x1] }
 0x204   :  { %v736_v30 = vsel %vm733_vm15, %v735_v29, %v731_v27  ;;  %v1039_v5 = vrot.slane %v1020_v0, 3  ;;  %v2853_v27 = vld [vmem:[%s3343_s2 + $0x70] sm:$0xff] }
 0x205   :  { %v706_v33 = vmul.f32 %v2066_v17, %v705_v1  ;;  %v742_v2 = vsub.f32 1.0, %v736_v30  ;;  %v744_v11 = vmul.f32 %v736_v30, %v2606_v12  ;;  %v1037_v1 = vrot.slane %v1019_v16, 4  ;;  %v2859_v29 = vld [vmem:[%s3342_s3 + $0x30] sm:$0xff]  ;;  %v2865_v30 = vld [vmem:[%s3342_s3 + $0x40] sm:$0xff] }
 0x207   :  { %v707_v45 = vadd.f32 %v2066_v17, %v706_v33 }
 0x209   :  { %v711_v18 = vsel %vm710_vm11, %v2066_v17, %v707_v45  ;;  %v1035_v17 = vrot.slane %v1018_v14, 5  ;;  %v1041_v45 = vrot.slane %v1021_v32, 2  ;;  %vm3359_vm11 = vcmask 326656   ;;  %v988_v32 = vpop.permute.xlu1 %987 }
 0x20a   :  { %v716_v8 = vsel %vm713_vm12, %v715_v42, %v711_v18  ;;  %vm3360_vm12 = vmmov %vm3359_vm11 }
 0x20b   :  { %v739_v22 = vmul.f32 %v738_v7, %v716_v8  ;;  %v1043_v7 = vrot.slane %v1022_v38, 1  ;;  %vm3361_vm7 = vmmov %vm3359_vm11 }
 0x20d   :  { %v740_v26 = vadd.f32 %v739_v22, %v632_v19 }
 0x20f   :  { %2067 = vtanh.f32 %v740_v26  ;;  %v2847_v26 = vld [vmem:[%s3342_s3 + $0x58] sm:$0xff] }
 0x215   :  { %v2068_v4 = vpop.eup %2067 }
 0x216   :  { %v743_v10 = vmul.f32 %v2068_v4, %v742_v2  ;;  %v2871_v2 = vld [vmem:[%s3343_s2 + $0x58] sm:$0xff] }
 0x217   :  { %v2877_v4 = vld [vmem:[%s3342_s3 + $0x18] sm:$0xff] }
 0x218   :  { %v745_v35 = vadd.f32 %v744_v11, %v743_v10  ;;  %v2889_v10 = vld [vmem:[%s3343_s2 + $0x40] sm:$0xff] }
 0x21a   :  { %v755_v36 = vsel %vm753_vm9, %v745_v35, 0.0  ;;  %v2717_v40 = vsel %vm753_vm9, %v745_v35, %v2606_v12  ;;  %v2895_v35 = vld [vmem:[%s3342_s3] sm:$0xff] }
 0x21b   :  { %v757_v39 = vrot.slane %v755_v36, 1  ;;  %v758_v43 = vrot.slane %v755_v36, 2  ;;  %v759_v47 = vrot.slane %v755_v36, 3  ;;  %771 = vst.msk [vmem:[%s3347_s5 + $0x2] sm:$0x1] %vm298_vm13, %v755_v36  ;;  %1996 = vmatmul.msk.f32.vlgmr.msrb.gmra.mxu2 %vm26_vm0, %v2717_v40  ;;  %1997 = vmatmul.msk.f32.vlgmr.msrb.gmra.mxu3 %vm26_vm0, %v2717_v40  ;;  %v760_v48 = vrot.slane %v755_v36, 4 }
 0x21c   :  { %1998 = vmatmul.msk.f32.vlgmr.msrb.gmra.mxu1 %vm26_vm0, %v2717_v40  ;;  %1142 = vmatpush.msrb.mxu2 %v2233_v9  ;;  %v761_v12 = vrot.slane %v755_v36, 5  ;;  %v762_v9 = vrot.slane %v755_v36, 6  ;;  %v763_v54 = vrot.slane %v755_v36, 7 }
 0x21d   :  { %772 = vst.msk [vmem:[%s3347_s5 + $0xa] sm:$0x1] %vm298_vm13, %v757_v39  ;;  %1294 = vmatpush.msrb.mxu1 %v2737_v50  ;;  %1314 = vmatpush.msrb.mxu3 %v2743_v52 }
 0x21e   :  { %773 = vst.msk [vmem:[%s3347_s5 + $0x12] sm:$0x1] %vm298_vm13, %v758_v43  ;;  %1143 = vmatpush.msrb.mxu2 %v2286_v25  ;;  %v2774_v25 = vld [vmem:[%s3343_s2 + $0x30] sm:$0xff]  ;;  %v2902_v43 = vld [vmem:[%s3343_s2 + $0x28] sm:$0xff] }
 0x21f   :  { %774 = vst.msk [vmem:[%s3347_s5 + $0x1a] sm:$0x1] %vm298_vm13, %v759_v47  ;;  %1295 = vmatpush.msrb.mxu1 %v2758_v56  ;;  %1315 = vmatpush.msrb.mxu3 %v2279_v24  ;;  %v2790_v24 = vld [vmem:[%s3343_s2 + $0x18] sm:$0xff] }
 0x220   :  { %775 = vst.msk [vmem:[%s3347_s5 + $0x22] sm:$0x1] %vm298_vm13, %v760_v48  ;;  %1144 = vmatpush.msrb.mxu2 %v2318_v34  ;;  %v828_v34 = vpop.f32.mrf.mxu3 }
 0x221   :  { %776 = vst.msk [vmem:[%s3347_s5 + $0x2a] sm:$0x1] %vm298_vm13, %v761_v12  ;;  %1296 = vmatpush.msrb.mxu1 %v2774_v25  ;;  %1316 = vmatpush.msrb.mxu3 %v2295_v28  ;;  %v2797_v28 = vld [vmem:[%s3343_s2] sm:$0xff] }
 0x222   :  { %777 = vst.msk [vmem:[%s3347_s5 + $0x32] sm:$0x1] %vm298_vm13, %v762_v9  ;;  %1145 = vmatpush.msrb.mxu2 %v2350_v44  ;;  %v848_v44 = vpop.f32.mrf.mxu1  ;;  %v2136_v12 = vld [vmem:[%s3345_s1] sm:$0xff] }
 0x223   :  { %778 = vst.msk [vmem:[%s3347_s5 + $0x3a] sm:$0x1] %vm298_vm13, %v763_v54  ;;  %1297 = vmatpush.msrb.mxu1 %v2790_v24  ;;  %1317 = vmatpush.msrb.mxu3 %v2303_v31  ;;  %v1016_v31 = vld [vmem:[%s3344_s0 + $0xc] sm:$0x1]  ;;  %vm1220_vm8 = vcmp.gt.s32.totalorder %v2136_v12, 4  ;;  %vm1456_vm9 = vcmp.gt.s32.totalorder %v2136_v12, 5 }
 0x224   :  { %v1031_v63 = vrot.slane %v1016_v31, 7 }
 0x225   :  { %1298 = vmatpush.msrb.mxu1 %v2797_v28  ;;  %1318 = vmatpush.msrb.mxu3 %v2338_v41  ;;  %v1015_v41 = vld [vmem:[%s3344_s0 + $0x4] sm:$0x1] }
 0x226   :  { %v1032_v46 = vsel %vm79_vm1, %v1031_v63, %v1015_v41  ;;  %v1457_v63 = vsel %vm1456_vm9, 1, %v2149_v13  ;;  %vm3362_vm9 = vcmask 1047559  }
 0x227   :  { %v1034_v37 = vsel %vm82_vm2, %v1033_v15, %v1032_v46 }
 0x228   :  { %v1036_v33 = vsel %vm85_vm3, %v1035_v17, %v1034_v37 }
 0x229   :  { %v1038_v55 = vsel %vm88_vm4, %v1037_v1, %v1036_v33 }
 0x22a   :  { %v1040_v42 = vsel %vm91_vm5, %v1039_v5, %v1038_v55 }
 0x22b   :  { %v1042_v19 = vsel %vm94_vm6, %v1041_v45, %v1040_v42 }
 0x22c   :  { %v1044_v21 = vsel %vm3358_vm10, %v1043_v7, %v1042_v19 }
 0x22d   :  { %2001 = vmatmul.msk.f32.vlgmr.msra.gmra.mxu2 %vm3359_vm11, %v1044_v21  ;;  %2002 = vmatmul.msk.f32.vlgmr.msra.gmra.mxu0 %vm3360_vm12, %v1044_v21 }
 0x22e   :  { %2003 = vmatmul.msk.f32.vlgmr.msra.gmra.mxu3 %vm3361_vm7, %v1044_v21  ;;  %1358 = vmatpush.msra.mxu0 %v2840_v23  ;;  %v2960_v21 = vld [vmem:[%s3343_s2 + $0x50] sm:$0xff] }
 0x22f   :  { %1398 = vmatpush.msra.mxu3 %v2847_v26  ;;  %1334 = vmatpush.msra.mxu2 %v2853_v27 }
 0x230   :  { %1359 = vmatpush.msra.mxu0 %v2859_v29 }
 0x231   :  { %1399 = vmatpush.msra.mxu3 %v2865_v30  ;;  %1335 = vmatpush.msra.mxu2 %v2871_v2 }
 0x232   :  { %1360 = vmatpush.msra.mxu0 %v2877_v4 }
 0x233   :  { %1400 = vmatpush.msra.mxu3 %v2883_v6  ;;  %1336 = vmatpush.msra.mxu2 %v2889_v10 }
 0x234   :  { %1361 = vmatpush.msra.mxu0 %v2895_v35 }
 0x235   :  { %1401 = vmatpush.msra.mxu3 %v2382_v51  ;;  %1337 = vmatpush.msra.mxu2 %v2902_v43  ;;  %v1221_v51 = vsel %vm1220_vm8, 1, %v2149_v13 }
 0x236   :  { %1223 = vperm.xlu2 %2037, %v1221_v51   ;;  %v1252_v51 = vld [vmem:[%s3344_s0 + $0xd] sm:$0x1] }
 0x237   :  { %1338 = vmatpush.msra.mxu2 %v2391_v53  ;;  %v868_v53 = vpop.f32.mrf.mxu0 }
 0x23e   :  { %1459 = vperm.xlu2 %2037, %v1457_v63   ;;  %v1256_v63 = vld [vmem:[%s3344_s0 + $0x2d] sm:$0x1] }
 0x29e   :  { %v891_v57 = vpop.f32.mrf.mxu2  ;;  %v911_v59 = vpop.f32.mrf.mxu3 }
 0x29f   :  { %v934_v60 = vadd.f32 %v891_v57, %v828_v34  ;;  %v954_v20 = vadd.f32 %v911_v59, %v848_v44  ;;  %v931_v57 = vpop.f32.mrf.mxu1 }
 0x2a1   :  { %v1999_v61 = vmul.f32 -1.442695, %v934_v60  ;;  %v2000_v62 = vmul.f32 -1.442695, %v954_v20 }
 0x2a3   :  { %2069 = vpow2.f32 %v1999_v61  ;;  %v974_v61 = vadd.f32 %v2490_v58, %v931_v57  ;;  %v1251_v57 = vld [vmem:[%s3344_s0 + $0x5] sm:$0x1] }
 0x2a4   :  { %2071 = vpow2.f32 %v2000_v62 }
 0x2a9   :  { %v2070_v18 = vpop.eup %2069 }
 0x2aa   :  { %v2072_v8 = vpop.eup %2071  ;;  %v938_v49 = vadd.f32 1.0, %v2070_v18 }
 0x2ab   :  { %v2832_v22 = vadd.f32 1.0, %v2072_v8  ;;  %v2949_v8 = vld [vmem:[%s3342_s3 + $0x38] sm:$0xff] }
 0x2ac   :  { %2073 = vrcp.f32 %v938_v49  ;;  %v950_v54 = vand.u32 2147483648, %v938_v49  ;;  %v948_v44 = vand.u32 2147483647, %v938_v49  ;;  %vm944_vm15 = vweird.f32 %v938_v49 }
 0x2ad   :  { %2075 = vrcp.f32 %v2832_v22  ;;  %v970_v41 = vand.u32 2147483648, %v2832_v22  ;;  %vm964_vm7 = vweird.f32 %v2832_v22  ;;  %v968_v15 = vand.u32 2147483647, %v2832_v22 }
 0x2ae   :  { %v951_v20 = vor.u32 1.1754944e-38, %v950_v54  ;;  %vm949_vm11 = vcmp.eq.f32.partialorder %v948_v44, 8.507059e+37  ;;  %v1267_v44 = vrot.slane %v1252_v51, 7 }
 0x2af   :  { %v971_v58 = vor.u32 1.1754944e-38, %v970_v41 }
 0x2b2   :  { %v2074_v11 = vpop.eup %2073 }
 0x2b3   :  { %v2076_v36 = vpop.eup %2075  ;;  %v940_v39 = vmul.f32 %v2074_v11, %v938_v49  ;;  %vm945_vm14 = vweird.f32 %v2074_v11 }
 0x2b4   :  { %v960_v47 = vmul.f32 %v2076_v36, %v2832_v22  ;;  %vm946_vm10 = vmor %vm944_vm15, %vm945_vm14  ;;  %vm965_vm12 = vweird.f32 %v2076_v36  ;;  %vm969_vm14 = vcmp.eq.f32.partialorder %v968_v15, 8.507059e+37  ;;  %vm989_vm15 = vcmp.eq.s32.totalorder %v988_v32, 1  ;;  %v2970_v22 = vld [vmem:[%s3342_s3 + $0x20] sm:$0xff]  ;;  %v1257_v15 = vld [vmem:[%s3344_s0 + $0x35] sm:$0x1] }
 0x2b5   :  { %v941_v48 = vsub.f32 1.0, %v940_v39  ;;  %vm966_vm8 = vmor %vm964_vm7, %vm965_vm12  ;;  %v3002_v39 = vld [vmem:[%s3343_s2 + $0x20] sm:$0xff] }
 0x2b6   :  { %v961_v9 = vsub.f32 1.0, %v960_v47  ;;  %v3009_v47 = vld [vmem:[%s3343_s2 + $0x8] sm:$0xff] }
 0x2b7   :  { %v942_v34 = vmul.f32 %v2074_v11, %v941_v48  ;;  %v1064_v48 = vpop.f32.mrf.mxu2 }
 0x2b8   :  { %v962_v59 = vmul.f32 %v2076_v36, %v961_v9 }
 0x2b9   :  { %v943_v60 = vadd.f32 %v2074_v11, %v942_v34  ;;  %v1253_v34 = vld [vmem:[%s3344_s0 + $0x15] sm:$0x1] }
 0x2ba   :  { %v963_v3 = vadd.f32 %v2076_v36, %v962_v59  ;;  %v1254_v59 = vld [vmem:[%s3344_s0 + $0x1d] sm:$0x1] }
 0x2bb   :  { %v947_v62 = vsel %vm946_vm10, %v2074_v11, %v943_v60  ;;  %v2981_v11 = vld [vmem:[%s3343_s2 + $0x38] sm:$0xff]  ;;  %v1269_v60 = vrot.slane %v1253_v34, 6  ;;  %vm3363_vm10 = vcmask 326656  }
 0x2bc   :  { %v952_v31 = vsel %vm949_vm11, %v951_v20, %v947_v62  ;;  %v967_v46 = vsel %vm966_vm8, %v2076_v36, %v963_v3  ;;  %v2991_v36 = vld [vmem:[%s3342_s3 + $0x8] sm:$0xff]  ;;  %v1084_v20 = vpop.f32.mrf.mxu0  ;;  %v1255_v62 = vld [vmem:[%s3344_s0 + $0x25] sm:$0x1]  ;;  %vm3364_vm11 = vmmov %vm3363_vm10 }
 0x2bd   :  { %v975_v14 = vmul.f32 %v974_v61, %v952_v31  ;;  %v972_v17 = vsel %vm969_vm14, %v971_v58, %v967_v46  ;;  %v1271_v31 = vrot.slane %v1254_v59, 5  ;;  %v1275_v46 = vrot.slane %v1256_v63, 3  ;;  %vm3365_vm12 = vmmov %vm3363_vm10 }
 0x2be   :  { %v978_v0 = vsub.f32 1.0, %v972_v17  ;;  %v980_v13 = vmul.f32 %v972_v17, %v2717_v40  ;;  %v1258_v17 = vld [vmem:[%s3344_s0 + $0x3d] sm:$0x1] }
 0x2bf   :  { %v976_v16 = vadd.f32 %v975_v14, %v868_v53  ;;  %v1268_v53 = vsel %vm79_vm1, %v1267_v44, %v1251_v57  ;;  %v1273_v14 = vrot.slane %v1255_v62, 4 }
 0x2c0   :  { %v1270_v41 = vsel %vm82_vm2, %v1269_v60, %v1268_v53  ;;  %v3072_v60 = vld [vmem:[%s3346_s4] ss:$0 sm:$0xff]  ;;  %v1104_v53 = vpop.f32.mrf.mxu3 }
 0x2c1   :  { %2077 = vtanh.f32 %v976_v16  ;;  %v1272_v16 = vsel %vm85_vm3, %v1271_v31, %v1270_v41 }
 0x2c7   :  { %v2078_v37 = vpop.eup %2077 }
 0x2c8   :  { %v979_v1 = vmul.f32 %v2078_v37, %v978_v0  ;;  %v1274_v0 = vsel %vm88_vm4, %v1273_v14, %v1272_v16  ;;  %v1277_v37 = vrot.slane %v1257_v15, 2 }
 0x2ca   :  { %v981_v33 = vadd.f32 %v980_v13, %v979_v1  ;;  %v1276_v1 = vsel %vm91_vm5, %v1275_v46, %v1274_v0  ;;  %v1279_v13 = vrot.slane %v1258_v17, 1 }
 0x2cc   :  { %v991_v5 = vsel %vm989_vm15, %v981_v33, 0.0  ;;  %v2918_v38 = vsel %vm989_vm15, %v981_v33, %v2717_v40  ;;  %v2933_v40 = vld [vmem:[%s3342_s3 + $0x50] sm:$0xff]  ;;  %v1278_v33 = vsel %vm94_vm6, %v1277_v37, %v1276_v1  ;;  %v1224_v1 = vpop.permute.xlu2 %1223 }
 0x2cd   :  { %v993_v55 = vrot.slane %v991_v5, 1  ;;  %v994_v45 = vrot.slane %v991_v5, 2  ;;  %v995_v42 = vrot.slane %v991_v5, 3  ;;  %1007 = vst.msk [vmem:[%s3347_s5 + $0x3] sm:$0x1] %vm298_vm13, %v991_v5  ;;  %2004 = vmatmul.msk.f32.vlgmr.msra.gmra.mxu1 %vm26_vm0, %v2918_v38  ;;  %2005 = vmatmul.msk.f32.vlgmr.msrb.gmra.mxu2 %vm26_vm0, %v2918_v38  ;;  %v996_v7 = vrot.slane %v991_v5, 4 }
 0x2ce   :  { %2006 = vmatmul.msk.f32.vlgmr.msrb.gmra.mxu0 %vm26_vm0, %v2918_v38  ;;  %1378 = vmatpush.msra.mxu1 %v2933_v40  ;;  %v997_v18 = vrot.slane %v991_v5, 5  ;;  %v998_v19 = vrot.slane %v991_v5, 6  ;;  %v999_v49 = vrot.slane %v991_v5, 7 }
 0x2cf   :  { %1008 = vst.msk [vmem:[%s3347_s5 + $0xb] sm:$0x1] %vm298_vm13, %v993_v55  ;;  %1530 = vmatpush.msrb.mxu0 %v2737_v50  ;;  %1550 = vmatpush.msrb.mxu2 %v2743_v52  ;;  %v1280_v55 = vsel %vm3362_vm9, %v1279_v13, %v1278_v33 }
 0x2d0   :  { %1009 = vst.msk [vmem:[%s3347_s5 + $0x13] sm:$0x1] %vm298_vm13, %v994_v45  ;;  %1379 = vmatpush.msra.mxu1 %v2949_v8  ;;  %2010 = vmatmul.msk.f32.vlgmr.msrb.gmra.mxu3 %vm3364_vm11, %v1280_v55 }
 0x2d1   :  { %1010 = vst.msk [vmem:[%s3347_s5 + $0x1b] sm:$0x1] %vm298_vm13, %v995_v42  ;;  %1531 = vmatpush.msrb.mxu0 %v2758_v56  ;;  %1551 = vmatpush.msrb.mxu2 %v2960_v21 }
 0x2d2   :  { %1011 = vst.msk [vmem:[%s3347_s5 + $0x23] sm:$0x1] %vm298_vm13, %v996_v7  ;;  %1380 = vmatpush.msra.mxu1 %v2970_v22  ;;  %1594 = vmatpush.msrb.mxu3 %v2840_v23 }
 0x2d3   :  { %1012 = vst.msk [vmem:[%s3347_s5 + $0x2b] sm:$0x1] %vm298_vm13, %v997_v18  ;;  %1532 = vmatpush.msrb.mxu0 %v2774_v25  ;;  %1552 = vmatpush.msrb.mxu2 %v2981_v11 }
 0x2d4   :  { %1013 = vst.msk [vmem:[%s3347_s5 + $0x33] sm:$0x1] %vm298_vm13, %v998_v19  ;;  %1381 = vmatpush.msra.mxu1 %v2991_v36  ;;  %1595 = vmatpush.msrb.mxu3 %v2859_v29  ;;  %v3059_v19 = vld [vmem:[%s3342_s3 + $0x10] sm:$0xff] }
 0x2d5   :  { %1014 = vst.msk [vmem:[%s3347_s5 + $0x3b] sm:$0x1] %vm298_vm13, %v999_v49  ;;  %1533 = vmatpush.msrb.mxu0 %v2790_v24  ;;  %1553 = vmatpush.msrb.mxu2 %v3002_v39 }
 0x2d6   :  { %2009 = vmatmul.msk.f32.vlgmr.msrb.gmra.mxu1 %vm3363_vm10, %v1280_v55  ;;  %2011 = vmatmul.msk.f32.vlgmr.msra.gmra.mxu2 %vm3365_vm12, %v1280_v55 }
 0x2d7   :  { %1534 = vmatpush.msrb.mxu0 %v2797_v28  ;;  %1554 = vmatpush.msrb.mxu2 %v3009_v47 }
 0x2d8   :  { %1570 = vmatpush.msrb.mxu1 %v2853_v27  ;;  %1596 = vmatpush.msrb.mxu3 %v2877_v4 }
 0x2d9   :  { %1634 = vmatpush.msra.mxu2 %v2847_v26 }
 0x2da   :  { %1571 = vmatpush.msrb.mxu1 %v2871_v2  ;;  %1597 = vmatpush.msrb.mxu3 %v2895_v35 }
 0x2db   :  { %1635 = vmatpush.msra.mxu2 %v2865_v30 }
 0x2dc   :  { %1572 = vmatpush.msrb.mxu1 %v2889_v10 }
 0x2dd   :  { %1636 = vmatpush.msra.mxu2 %v2883_v6 }
 0x2de   :  { %1573 = vmatpush.msrb.mxu1 %v2902_v43 }
 0x2df   :  { %1637 = vmatpush.msra.mxu2 %v3059_v19 }
 0x34a   :  { %v1127_v12 = vpop.f32.mrf.mxu1 }
 0x34b   :  { %v1170_v9 = vadd.f32 %v1127_v12, %v1064_v48  ;;  %v3066_v48 = vld [vmem:[%s3343_s2 + $0x10] sm:$0xff]  ;;  %v1167_v34 = vpop.f32.mrf.mxu0 }
 0x34c   :  { %1574 = vmatpush.msrb.mxu1 %v3066_v48 }
 0x34d   :  { %v2007_v54 = vmul.f32 -1.442695, %v1170_v9 }
 0x34f   :  { %2079 = vpow2.f32 %v2007_v54 }
 0x350   :  { %v1147_v61 = vpop.f32.mrf.mxu2 }
 0x351   :  { %v1190_v3 = vadd.f32 %v1147_v61, %v1084_v20  ;;  %v1210_v20 = vadd.f32 %v3072_v60, %v1167_v34 }
 0x353   :  { %v2008_v58 = vmul.f32 -1.442695, %v1190_v3 }
 0x355   :  { %v2080_v32 = vpop.eup %2079  ;;  %2081 = vpow2.f32 %v2008_v58 }
 0x356   :  { %v1174_v5 = vadd.f32 1.0, %v2080_v32 }
 0x358   :  { %2083 = vrcp.f32 %v1174_v5  ;;  %v1186_v12 = vand.u32 2147483648, %v1174_v5  ;;  %v1184_v54 = vand.u32 2147483647, %v1174_v5  ;;  %vm1180_vm8 = vweird.f32 %v1174_v5 }
 0x35a   :  { %v1187_v59 = vor.u32 1.1754944e-38, %v1186_v12  ;;  %vm1185_vm15 = vcmp.eq.f32.partialorder %v1184_v54, 8.507059e+37 }
 0x35b   :  { %v2082_v45 = vpop.eup %2081 }
 0x35c   :  { %v1194_v42 = vadd.f32 1.0, %v2082_v45 }
 0x35e   :  { %v2084_v7 = vpop.eup %2083  ;;  %2085 = vrcp.f32 %v1194_v42  ;;  %v1206_v41 = vand.u32 2147483648, %v1194_v42  ;;  %v1204_v14 = vand.u32 2147483647, %v1194_v42  ;;  %vm1200_vm10 = vweird.f32 %v1194_v42 }
 0x35f   :  { %v1176_v18 = vmul.f32 %v2084_v7, %v1174_v5  ;;  %vm1181_vm7 = vweird.f32 %v2084_v7 }
 0x360   :  { %vm1182_vm14 = vmor %vm1180_vm8, %vm1181_vm7  ;;  %v1207_v58 = vor.u32 1.1754944e-38, %v1206_v41  ;;  %vm1205_vm12 = vcmp.eq.f32.partialorder %v1204_v14, 8.507059e+37  ;;  %vm1225_vm7 = vcmp.eq.s32.totalorder %v1224_v1, 1  ;;  %vm3366_vm8 = vcmask 1047559  }
 0x361   :  { %v1177_v49 = vsub.f32 1.0, %v1176_v18 }
 0x363   :  { %v1178_v9 = vmul.f32 %v2084_v7, %v1177_v49 }
 0x364   :  { %v2086_v51 = vpop.eup %2085 }
 0x365   :  { %v1196_v44 = vmul.f32 %v2086_v51, %v1194_v42  ;;  %v1179_v57 = vadd.f32 %v2084_v7, %v1178_v9  ;;  %vm1201_vm9 = vweird.f32 %v2086_v51 }
 0x366   :  { %vm1202_vm11 = vmor %vm1200_vm10, %vm1201_vm9 }
 0x367   :  { %v1197_v61 = vsub.f32 1.0, %v1196_v44  ;;  %v1183_v62 = vsel %vm1182_vm14, %v2084_v7, %v1179_v57  ;;  %v1491_v44 = vld [vmem:[%s3344_s0 + $0x26] sm:$0x1]  ;;  %vm3367_vm14 = vcmask 326656  }
 0x368   :  { %v1188_v31 = vsel %vm1185_vm15, %v1187_v59, %v1183_v62  ;;  %v1509_v62 = vrot.slane %v1491_v44, 4  ;;  %vm3368_vm15 = vmmov %vm3367_vm14 }
 0x369   :  { %v1211_v3 = vmul.f32 %v1210_v20, %v1188_v31  ;;  %v1198_v63 = vmul.f32 %v2086_v51, %v1197_v61  ;;  %v1492_v20 = vld [vmem:[%s3344_s0 + $0x2e] sm:$0x1]  ;;  %vm3369_vm9 = vmmov %vm3367_vm14 }
 0x36b   :  { %v1212_v15 = vadd.f32 %v1211_v3, %v1104_v53  ;;  %v1199_v16 = vadd.f32 %v2086_v51, %v1198_v63  ;;  %v1493_v53 = vld [vmem:[%s3344_s0 + $0x36] sm:$0x1]  ;;  %v1511_v3 = vrot.slane %v1492_v20, 3  ;;  %v1494_v63 = vld [vmem:[%s3344_s0 + $0x3e] sm:$0x1] }
 0x36c   :  { %v1513_v14 = vrot.slane %v1493_v53, 2  ;;  %v1724_v53 = vld [vmem:[%s3344_s0 + $0xf] sm:$0x1] }
 0x36d   :  { %2087 = vtanh.f32 %v1212_v15  ;;  %v1203_v46 = vsel %vm1202_vm11, %v2086_v51, %v1199_v16  ;;  %v1488_v51 = vld [vmem:[%s3344_s0 + $0xe] sm:$0x1]  ;;  %v1515_v16 = vrot.slane %v1494_v63, 1  ;;  %v1723_v63 = vld [vmem:[%s3344_s0 + $0x7] sm:$0x1] }
 0x36e   :  { %v1208_v17 = vsel %vm1205_vm12, %v1207_v58, %v1203_v46 }
 0x36f   :  { %v1214_v0 = vsub.f32 1.0, %v1208_v17  ;;  %v1216_v32 = vmul.f32 %v1208_v17, %v2918_v38 }
 0x373   :  { %v2088_v37 = vpop.eup %2087 }
 0x374   :  { %v1215_v13 = vmul.f32 %v2088_v37, %v1214_v0 }
 0x376   :  { %v1217_v33 = vadd.f32 %v1216_v32, %v1215_v13 }
 0x378   :  { %v3077_v5 = vsel %vm1225_vm7, %v1217_v33, %v2918_v38  ;;  %v1227_v55 = vsel %vm1225_vm7, %v1217_v33, 0.0 }
 0x379   :  { %v1229_v45 = vrot.slane %v1227_v55, 1  ;;  %v1230_v42 = vrot.slane %v1227_v55, 2  ;;  %v1231_v7 = vrot.slane %v1227_v55, 3  ;;  %1243 = vst.msk [vmem:[%s3347_s5 + $0x4] sm:$0x1] %vm298_vm13, %v1227_v55  ;;  %2012 = vmatmul.msk.f32.vlgmr.msra.gmra.mxu0 %vm26_vm0, %v3077_v5  ;;  %2013 = vmatmul.msk.f32.vlgmr.msra.gmra.mxu1 %vm26_vm0, %v3077_v5  ;;  %v1232_v18 = vrot.slane %v1227_v55, 4 }
 0x37a   :  { %2014 = vmatmul.msk.f32.vlgmr.msra.gmra.mxu3 %vm26_vm0, %v3077_v5  ;;  %1614 = vmatpush.msra.mxu0 %v2933_v40  ;;  %v1233_v38 = vrot.slane %v1227_v55, 5  ;;  %v1234_v49 = vrot.slane %v1227_v55, 6  ;;  %v1235_v12 = vrot.slane %v1227_v55, 7 }
 0x37b   :  { %1244 = vst.msk [vmem:[%s3347_s5 + $0xc] sm:$0x1] %vm298_vm13, %v1229_v45  ;;  %1766 = vmatpush.msra.mxu3 %v2737_v50  ;;  %1786 = vmatpush.msra.mxu1 %v2743_v52  ;;  %v1300_v50 = vpop.f32.mrf.mxu1  ;;  %v1320_v52 = vpop.f32.mrf.mxu3 }
 0x37c   :  { %1245 = vst.msk [vmem:[%s3347_s5 + $0x14] sm:$0x1] %vm298_vm13, %v1230_v42  ;;  %1615 = vmatpush.msra.mxu0 %v2949_v8 }
 0x37d   :  { %1246 = vst.msk [vmem:[%s3347_s5 + $0x1c] sm:$0x1] %vm298_vm13, %v1231_v7  ;;  %1767 = vmatpush.msra.mxu3 %v2758_v56  ;;  %1787 = vmatpush.msra.mxu1 %v2960_v21 }
 0x37e   :  { %1247 = vst.msk [vmem:[%s3347_s5 + $0x24] sm:$0x1] %vm298_vm13, %v1232_v18  ;;  %1616 = vmatpush.msra.mxu0 %v2970_v22 }
 0x37f   :  { %1248 = vst.msk [vmem:[%s3347_s5 + $0x2c] sm:$0x1] %vm298_vm13, %v1233_v38  ;;  %1768 = vmatpush.msra.mxu3 %v2774_v25  ;;  %1788 = vmatpush.msra.mxu1 %v2981_v11 }
 0x380   :  { %1249 = vst.msk [vmem:[%s3347_s5 + $0x34] sm:$0x1] %vm298_vm13, %v1234_v49  ;;  %1617 = vmatpush.msra.mxu0 %v2991_v36 }
 0x381   :  { %1250 = vst.msk [vmem:[%s3347_s5 + $0x3c] sm:$0x1] %vm298_vm13, %v1235_v12  ;;  %1769 = vmatpush.msra.mxu3 %v2790_v24  ;;  %1789 = vmatpush.msra.mxu1 %v3002_v39  ;;  %v1489_v24 = vld [vmem:[%s3344_s0 + $0x16] sm:$0x1]  ;;  %v1503_v39 = vrot.slane %v1488_v51, 7 }
 0x382   :  { %v1505_v34 = vrot.slane %v1489_v24, 6 }
 0x383   :  { %1770 = vmatpush.msra.mxu3 %v2797_v28  ;;  %1790 = vmatpush.msra.mxu1 %v3009_v47  ;;  %v1487_v28 = vld [vmem:[%s3344_s0 + $0x6] sm:$0x1]  ;;  %v1490_v47 = vld [vmem:[%s3344_s0 + $0x1e] sm:$0x1] }
 0x384   :  { %v1504_v57 = vsel %vm79_vm1, %v1503_v39, %v1487_v28  ;;  %v1507_v59 = vrot.slane %v1490_v47, 5 }
 0x385   :  { %v1506_v61 = vsel %vm82_vm2, %v1505_v34, %v1504_v57 }
 0x386   :  { %v1508_v31 = vsel %vm85_vm3, %v1507_v59, %v1506_v61 }
 0x387   :  { %v1510_v41 = vsel %vm88_vm4, %v1509_v62, %v1508_v31  ;;  %v1739_v31 = vrot.slane %v1724_v53, 7 }
 0x388   :  { %v1512_v15 = vsel %vm91_vm5, %v1511_v3, %v1510_v41  ;;  %v1726_v41 = vld [vmem:[%s3344_s0 + $0x1f] sm:$0x1] }
 0x389   :  { %v1514_v58 = vsel %vm94_vm6, %v1513_v14, %v1512_v15 }
 0x38a   :  { %v1516_v37 = vsel %vm3366_vm8, %v1515_v16, %v1514_v58  ;;  %v1727_v16 = vld [vmem:[%s3344_s0 + $0x27] sm:$0x1]  ;;  %v1743_v58 = vrot.slane %v1726_v41, 5 }
 0x38b   :  { %2017 = vmatmul.msk.f32.vlgmr.msrb.gmra.mxu0 %vm3367_vm14, %v1516_v37  ;;  %2018 = vmatmul.msk.f32.vlgmr.msrb.gmra.mxu2 %vm3368_vm15, %v1516_v37 }
 0x38c   :  { %2019 = vmatmul.msk.f32.vlgmr.msrb.gmra.mxu1 %vm3369_vm9, %v1516_v37  ;;  %1830 = vmatpush.msrb.mxu2 %v2840_v23  ;;  %v1745_v37 = vrot.slane %v1727_v16, 4 }
 0x38d   :  { %1870 = vmatpush.msrb.mxu1 %v2847_v26  ;;  %1806 = vmatpush.msrb.mxu0 %v2853_v27 }
 0x38e   :  { %1831 = vmatpush.msrb.mxu2 %v2859_v29 }
 0x38f   :  { %1871 = vmatpush.msrb.mxu1 %v2865_v30  ;;  %1807 = vmatpush.msrb.mxu0 %v2871_v2 }
 0x390   :  { %1832 = vmatpush.msrb.mxu2 %v2877_v4 }
 0x391   :  { %1872 = vmatpush.msrb.mxu1 %v2883_v6  ;;  %1808 = vmatpush.msrb.mxu0 %v2889_v10 }
 0x392   :  { %1833 = vmatpush.msrb.mxu2 %v2895_v35 }
 0x393   :  { %1873 = vmatpush.msrb.mxu1 %v3059_v19  ;;  %1809 = vmatpush.msrb.mxu0 %v2902_v43  ;;  %v1340_v43 = vpop.f32.mrf.mxu2 }
 0x395   :  { %1810 = vmatpush.msrb.mxu0 %v3066_v48 }
 0x3f6   :  { %v1363_v56 = vpop.f32.mrf.mxu0  ;;  %v1383_v25 = vpop.f32.mrf.mxu1 }
 0x3f7   :  { %v1406_v21 = vadd.f32 %v1363_v56, %v1300_v50  ;;  %v1426_v11 = vadd.f32 %v1383_v25, %v1320_v52  ;;  %v1460_v25 = vpop.permute.xlu2 %1459 }
 0x3f9   :  { %v2015_v9 = vmul.f32 -1.442695, %v1406_v21  ;;  %v2016_v54 = vmul.f32 -1.442695, %v1426_v11 }
 0x3fb   :  { %2089 = vpow2.f32 %v2015_v9 }
 0x3fc   :  { %2091 = vpow2.f32 %v2016_v54 }
 0x3fd   :  { %v1403_v10 = vpop.f32.mrf.mxu3 }
 0x3fe   :  { %v1446_v55 = vadd.f32 %v3072_v60, %v1403_v10 }
 0x401   :  { %v2090_v46 = vpop.eup %2089 }
 0x402   :  { %v2092_v17 = vpop.eup %2091  ;;  %v1410_v0 = vadd.f32 1.0, %v2090_v46  ;;  %v1740_v46 = vsel %vm79_vm1, %v1739_v31, %v1723_v63  ;;  %vm3370_vm1 = vcmask 1047559  }
 0x403   :  { %v1430_v1 = vadd.f32 1.0, %v2092_v17  ;;  %v1728_v17 = vld [vmem:[%s3344_s0 + $0x2f] sm:$0x1] }
 0x404   :  { %2093 = vrcp.f32 %v1410_v0  ;;  %v1422_v30 = vand.u32 2147483648, %v1410_v0  ;;  %v1420_v4 = vand.u32 2147483647, %v1410_v0  ;;  %vm1416_vm11 = vweird.f32 %v1410_v0 }
 0x405   :  { %2095 = vrcp.f32 %v1430_v1  ;;  %v1442_v48 = vand.u32 2147483648, %v1430_v1  ;;  %vm1436_vm14 = vweird.f32 %v1430_v1  ;;  %v1440_v18 = vand.u32 2147483647, %v1430_v1 }
 0x406   :  { %v1423_v35 = vor.u32 1.1754944e-38, %v1422_v30  ;;  %vm1421_vm7 = vcmp.eq.f32.partialorder %v1420_v4, 8.507059e+37 }
 0x407   :  { %v1443_v12 = vor.u32 1.1754944e-38, %v1442_v48  ;;  %vm1441_vm9 = vcmp.eq.f32.partialorder %v1440_v18, 8.507059e+37 }
 0x40a   :  { %v2094_v13 = vpop.eup %2093 }
 0x40b   :  { %v2096_v23 = vpop.eup %2095  ;;  %v1412_v32 = vmul.f32 %v2094_v13, %v1410_v0  ;;  %vm1417_vm10 = vweird.f32 %v2094_v13 }
 0x40c   :  { %v1432_v26 = vmul.f32 %v2096_v23, %v1430_v1  ;;  %vm1418_vm12 = vmor %vm1416_vm11, %vm1417_vm10  ;;  %vm1437_vm8 = vweird.f32 %v2096_v23  ;;  %vm1461_vm10 = vcmp.eq.s32.totalorder %v1460_v25, 1  ;;  %v1729_v1 = vld [vmem:[%s3344_s0 + $0x37] sm:$0x1] }
 0x40d   :  { %v1413_v27 = vsub.f32 1.0, %v1412_v32  ;;  %vm1438_vm15 = vmor %vm1436_vm14, %vm1437_vm8  ;;  %v1747_v32 = vrot.slane %v1728_v17, 3 }
 0x40e   :  { %v1433_v29 = vsub.f32 1.0, %v1432_v26  ;;  %v1749_v26 = vrot.slane %v1729_v1, 2 }
 0x40f   :  { %v1414_v2 = vmul.f32 %v2094_v13, %v1413_v27 }
 0x410   :  { %v1434_v6 = vmul.f32 %v2096_v23, %v1433_v29 }
 0x411   :  { %v1415_v33 = vadd.f32 %v2094_v13, %v1414_v2 }
 0x412   :  { %v1435_v42 = vadd.f32 %v2096_v23, %v1434_v6 }
 0x413   :  { %v1419_v19 = vsel %vm1418_vm12, %v2094_v13, %v1415_v33  ;;  %v1730_v13 = vld [vmem:[%s3344_s0 + $0x3f] sm:$0x1] }
 0x414   :  { %v1424_v45 = vsel %vm1421_vm7, %v1423_v35, %v1419_v19  ;;  %v1439_v49 = vsel %vm1438_vm15, %v2096_v23, %v1435_v42  ;;  %v1751_v29 = vrot.slane %v1730_v13, 1 }
 0x415   :  { %v1447_v7 = vmul.f32 %v1446_v55, %v1424_v45  ;;  %v1444_v50 = vsel %vm1441_vm9, %v1443_v12, %v1439_v49 }
 0x416   :  { %v1450_v52 = vsub.f32 1.0, %v1444_v50  ;;  %v1452_v11 = vmul.f32 %v1444_v50, %v3077_v5 }
 0x417   :  { %v1448_v38 = vadd.f32 %v1447_v7, %v1340_v43 }
 0x419   :  { %2097 = vtanh.f32 %v1448_v38 }
 0x41f   :  { %v2098_v56 = vpop.eup %2097 }
 0x420   :  { %v1451_v21 = vmul.f32 %v2098_v56, %v1450_v52  ;;  %v1576_v56 = vpop.f32.mrf.mxu1 }
 0x422   :  { %v1453_v9 = vadd.f32 %v1452_v11, %v1451_v21 }
 0x424   :  { %v1463_v54 = vsel %vm1461_vm10, %v1453_v9, 0.0  ;;  %v3181_v51 = vsel %vm1461_vm10, %v1453_v9, %v3077_v5 }
 0x425   :  { %v1465_v24 = vrot.slane %v1463_v54, 1  ;;  %v1466_v39 = vrot.slane %v1463_v54, 2  ;;  %v1467_v28 = vrot.slane %v1463_v54, 3  ;;  %1479 = vst.msk [vmem:[%s3347_s5 + $0x5] sm:$0x1] %vm298_vm13, %v1463_v54  ;;  %2020 = vmatmul.msk.f32.vlgmr.msrb.gmra.mxu3 %vm26_vm0, %v3181_v51  ;;  %2021 = vmatmul.msk.f32.vlgmr.msra.gmra.mxu0 %vm26_vm0, %v3181_v51  ;;  %v1468_v47 = vrot.slane %v1463_v54, 4 }
 0x426   :  { %2022 = vmatmul.msk.f32.vlgmr.msra.gmra.mxu2 %vm26_vm0, %v3181_v51  ;;  %1850 = vmatpush.msrb.mxu3 %v2933_v40  ;;  %v1469_v5 = vrot.slane %v1463_v54, 5  ;;  %v1470_v34 = vrot.slane %v1463_v54, 6  ;;  %v1471_v44 = vrot.slane %v1463_v54, 7  ;;  %v1536_v40 = vpop.f32.mrf.mxu0 }
 0x427   :  { %1480 = vst.msk [vmem:[%s3347_s5 + $0xd] sm:$0x1] %vm298_vm13, %v1465_v24 }
 0x428   :  { %1481 = vst.msk [vmem:[%s3347_s5 + $0x15] sm:$0x1] %vm298_vm13, %v1466_v39  ;;  %1851 = vmatpush.msrb.mxu3 %v2949_v8  ;;  %v1556_v8 = vpop.f32.mrf.mxu2 }
 0x429   :  { %1482 = vst.msk [vmem:[%s3347_s5 + $0x1d] sm:$0x1] %vm298_vm13, %v1467_v28 }
 0x42a   :  { %1483 = vst.msk [vmem:[%s3347_s5 + $0x25] sm:$0x1] %vm298_vm13, %v1468_v47  ;;  %1852 = vmatpush.msrb.mxu3 %v2970_v22 }
 0x42b   :  { %1484 = vst.msk [vmem:[%s3347_s5 + $0x2d] sm:$0x1] %vm298_vm13, %v1469_v5 }
 0x42c   :  { %1485 = vst.msk [vmem:[%s3347_s5 + $0x35] sm:$0x1] %vm298_vm13, %v1470_v34  ;;  %1853 = vmatpush.msrb.mxu3 %v2991_v36  ;;  %v1725_v36 = vld [vmem:[%s3344_s0 + $0x17] sm:$0x1] }
 0x42d   :  { %1486 = vst.msk [vmem:[%s3347_s5 + $0x3d] sm:$0x1] %vm298_vm13, %v1471_v44  ;;  %v1741_v14 = vrot.slane %v1725_v36, 6  ;;  %v1696_v44 = vpop.permute.xlu0 %1695 }
 0x42e   :  { %vm1697_vm9 = vcmp.eq.s32.totalorder %v1696_v44, 1 }
 0x42f   :  { %v1742_v0 = vsel %vm82_vm2, %v1741_v14, %v1740_v46  ;;  %vm3371_vm2 = vcmask 326656  }
 0x430   :  { %v1744_v23 = vsel %vm85_vm3, %v1743_v58, %v1742_v0  ;;  %vm3372_vm11 = vmmov %vm3371_vm2 }
 0x431   :  { %v1746_v27 = vsel %vm88_vm4, %v1745_v37, %v1744_v23  ;;  %vm3373_vm3 = vmmov %vm3371_vm2 }
 0x432   :  { %v1748_v2 = vsel %vm91_vm5, %v1747_v32, %v1746_v27 }
 0x433   :  { %v1750_v6 = vsel %vm94_vm6, %v1749_v26, %v1748_v2 }
 0x434   :  { %v1752_v10 = vsel %vm3370_vm1, %v1751_v29, %v1750_v6 }
 0x435   :  { %2025 = vmatmul.msk.f32.vlgmr.msra.gmra.mxu3 %vm3371_vm2, %v1752_v10  ;;  %2026 = vmatmul.msk.f32.vlgmr.msra.gmra.mxu1 %vm3372_vm11, %v1752_v10 }
 0x436   :  { %2027 = vmatmul.msk.f32.vlgmr.msrb.gmra.mxu0 %vm3373_vm3, %v1752_v10 }
 0x4a2   :  { %v1619_v22 = vpop.f32.mrf.mxu0 }
 0x4a3   :  { %v1662_v57 = vadd.f32 %v1619_v22, %v1556_v8 }
 0x4a5   :  { %v2024_v59 = vmul.f32 -1.442695, %v1662_v57 }
 0x4a7   :  { %2099 = vpow2.f32 %v2024_v59 }
 0x4a8   :  { %v1599_v20 = vpop.f32.mrf.mxu3 }
 0x4a9   :  { %v1642_v61 = vadd.f32 %v1599_v20, %v1536_v40  ;;  %v1639_v38 = vpop.f32.mrf.mxu2 }
 0x4aa   :  { %v1682_v50 = vadd.f32 %v3072_v60, %v1639_v38 }
 0x4ab   :  { %v2023_v62 = vmul.f32 -1.442695, %v1642_v61 }
 0x4ad   :  { %v2100_v3 = vpop.eup %2099  ;;  %2101 = vpow2.f32 %v2023_v62 }
 0x4ae   :  { %v1666_v15 = vadd.f32 1.0, %v2100_v3 }
 0x4b0   :  { %2103 = vrcp.f32 %v1666_v15  ;;  %v1678_v11 = vand.u32 2147483648, %v1666_v15  ;;  %vm1672_vm8 = vweird.f32 %v1666_v15  ;;  %v1676_v54 = vand.u32 2147483647, %v1666_v15 }
 0x4b2   :  { %v1679_v28 = vor.u32 1.1754944e-38, %v1678_v11  ;;  %vm1677_vm15 = vcmp.eq.f32.partialorder %v1676_v54, 8.507059e+37  ;;  %v1792_v63 = vpop.f32.mrf.mxu1 }
 0x4b3   :  { %v2102_v30 = vpop.eup %2101 }
 0x4b4   :  { %v1646_v4 = vadd.f32 1.0, %v2102_v30 }
 0x4b6   :  { %2105 = vrcp.f32 %v1646_v4  ;;  %v2104_v33 = vpop.eup %2103  ;;  %v1658_v42 = vand.u32 2147483648, %v1646_v4  ;;  %v1656_v7 = vand.u32 2147483647, %v1646_v4  ;;  %vm1652_vm5 = vweird.f32 %v1646_v4 }
 0x4b7   :  { %v1668_v35 = vmul.f32 %v2104_v33, %v1666_v15  ;;  %vm1673_vm7 = vweird.f32 %v2104_v33 }
 0x4b8   :  { %v1659_v12 = vor.u32 1.1754944e-38, %v1658_v42  ;;  %vm1657_vm12 = vcmp.eq.f32.partialorder %v1656_v7, 8.507059e+37  ;;  %vm1674_vm14 = vmor %vm1672_vm8, %vm1673_vm7  ;;  %v1772_v3 = vpop.f32.mrf.mxu3 }
 0x4b9   :  { %v1669_v43 = vsub.f32 1.0, %v1668_v35 }
 0x4bb   :  { %v1670_v18 = vmul.f32 %v2104_v33, %v1669_v43  ;;  %v1812_v43 = vpop.f32.mrf.mxu0 }
 0x4bc   :  { %v2106_v55 = vpop.eup %2105 }
 0x4bd   :  { %v1648_v19 = vmul.f32 %v2106_v55, %v1646_v4  ;;  %vm1653_vm4 = vweird.f32 %v2106_v55  ;;  %v1671_v21 = vadd.f32 %v2104_v33, %v1670_v18 }
 0x4be   :  { %vm1654_vm6 = vmor %vm1652_vm5, %vm1653_vm4 }
 0x4bf   :  { %v1649_v45 = vsub.f32 1.0, %v1648_v19  ;;  %v1675_v39 = vsel %vm1674_vm14, %v2104_v33, %v1671_v21 }
 0x4c0   :  { %v1680_v47 = vsel %vm1677_vm15, %v1679_v28, %v1675_v39 }
 0x4c1   :  { %v1650_v48 = vmul.f32 %v2106_v55, %v1649_v45  ;;  %v1686_v5 = vsub.f32 1.0, %v1680_v47  ;;  %v1688_v8 = vmul.f32 %v1680_v47, %v3181_v51 }
 0x4c3   :  { %v1651_v49 = vadd.f32 %v2106_v55, %v1650_v48 }
 0x4c5   :  { %v1655_v52 = vsel %vm1654_vm6, %v2106_v55, %v1651_v49 }
 0x4c6   :  { %v1660_v25 = vsel %vm1657_vm12, %v1659_v12, %v1655_v52 }
 0x4c7   :  { %v1683_v9 = vmul.f32 %v1682_v50, %v1660_v25 }
 0x4c9   :  { %v1684_v24 = vadd.f32 %v1683_v9, %v1576_v56 }
 0x4cb   :  { %2107 = vtanh.f32 %v1684_v24 }
 0x4d1   :  { %v2108_v34 = vpop.eup %2107 }
 0x4d2   :  { %v1687_v40 = vmul.f32 %v2108_v34, %v1686_v5 }
 0x4d4   :  { %v1689_v22 = vadd.f32 %v1688_v8, %v1687_v40 }
 0x4d6   :  { %v1699_v57 = vsel %vm1697_vm9, %v1689_v22, 0.0  ;;  %v3262_v59 = vsel %vm1697_vm9, %v1689_v22, %v3181_v51 }
 0x4d7   :  { %v1701_v20 = vrot.slane %v1699_v57, 1  ;;  %v1702_v61 = vrot.slane %v1699_v57, 2  ;;  %v1703_v62 = vrot.slane %v1699_v57, 3  ;;  %1715 = vst.msk [vmem:[%s3347_s5 + $0x6] sm:$0x1] %vm298_vm13, %v1699_v57  ;;  %2028 = vmatmul.msk.f32.vlgmr.msrb.gmra.mxu2 %vm26_vm0, %v3262_v59  ;;  %2029 = vmatmul.msk.f32.vlgmr.msrb.gmra.mxu3 %vm26_vm0, %v3262_v59  ;;  %v1704_v53 = vrot.slane %v1699_v57, 4 }
 0x4d8   :  { %2030 = vmatmul.msk.f32.vlgmr.msrb.gmra.mxu1 %vm26_vm0, %v3262_v59  ;;  %v1705_v51 = vrot.slane %v1699_v57, 5  ;;  %v1706_v36 = vrot.slane %v1699_v57, 6  ;;  %v1707_v31 = vrot.slane %v1699_v57, 7 }
 0x4d9   :  { %1716 = vst.msk [vmem:[%s3347_s5 + $0xe] sm:$0x1] %vm298_vm13, %v1701_v20 }
 0x4da   :  { %1717 = vst.msk [vmem:[%s3347_s5 + $0x16] sm:$0x1] %vm298_vm13, %v1702_v61 }
 0x4db   :  { %1718 = vst.msk [vmem:[%s3347_s5 + $0x1e] sm:$0x1] %vm298_vm13, %v1703_v62 }
 0x4dc   :  { %1719 = vst.msk [vmem:[%s3347_s5 + $0x26] sm:$0x1] %vm298_vm13, %v1704_v53 }
 0x4dd   :  { %1720 = vst.msk [vmem:[%s3347_s5 + $0x2e] sm:$0x1] %vm298_vm13, %v1705_v51 }
 0x4de   :  { %1721 = vst.msk [vmem:[%s3347_s5 + $0x36] sm:$0x1] %vm298_vm13, %v1706_v36 }
 0x4df   :  { %1722 = vst.msk [vmem:[%s3347_s5 + $0x3e] sm:$0x1] %vm298_vm13, %v1707_v31 }
 0x555   :  { %v1875_v6 = vpop.f32.mrf.mxu1 }
 0x556   :  { %v1918_v55 = vadd.f32 %v3072_v60, %v1875_v6  ;;  %v1932_v60 = vpop.permute.xlu1 %1931 }
 0x557   :  { %vm1933_vm12 = vcmp.eq.s32.totalorder %v1932_v60, 1 }
 0x55a   :  { %v1835_v41 = vpop.f32.mrf.mxu2  ;;  %v1855_v14 = vpop.f32.mrf.mxu3 }
 0x55b   :  { %v1878_v15 = vadd.f32 %v1835_v41, %v1772_v3  ;;  %v1898_v16 = vadd.f32 %v1855_v14, %v1792_v63 }
 0x55d   :  { %v2031_v46 = vmul.f32 -1.442695, %v1878_v15  ;;  %v2032_v58 = vmul.f32 -1.442695, %v1898_v16 }
 0x55f   :  { %2109 = vpow2.f32 %v2031_v46 }
 0x560   :  { %2111 = vpow2.f32 %v2032_v58 }
 0x565   :  { %v2110_v17 = vpop.eup %2109 }
 0x566   :  { %v2112_v0 = vpop.eup %2111  ;;  %v1882_v37 = vadd.f32 1.0, %v2110_v17 }
 0x567   :  { %v1902_v1 = vadd.f32 1.0, %v2112_v0 }
 0x568   :  { %2113 = vrcp.f32 %v1882_v37  ;;  %v1894_v30 = vand.u32 2147483648, %v1882_v37  ;;  %v1892_v4 = vand.u32 2147483647, %v1882_v37  ;;  %vm1888_vm1 = vweird.f32 %v1882_v37 }
 0x569   :  { %2115 = vrcp.f32 %v1902_v1  ;;  %v1914_v48 = vand.u32 2147483648, %v1902_v1  ;;  %vm1908_vm4 = vweird.f32 %v1902_v1  ;;  %v1912_v18 = vand.u32 2147483647, %v1902_v1 }
 0x56a   :  { %v1895_v35 = vor.u32 1.1754944e-38, %v1894_v30  ;;  %vm1893_vm11 = vcmp.eq.f32.partialorder %v1892_v4, 8.507059e+37 }
 0x56b   :  { %v1915_v12 = vor.u32 1.1754944e-38, %v1914_v48  ;;  %vm1913_vm6 = vcmp.eq.f32.partialorder %v1912_v18, 8.507059e+37 }
 0x56e   :  { %v2114_v13 = vpop.eup %2113 }
 0x56f   :  { %v2116_v23 = vpop.eup %2115  ;;  %v1884_v32 = vmul.f32 %v2114_v13, %v1882_v37  ;;  %vm1889_vm10 = vweird.f32 %v2114_v13 }
 0x570   :  { %v1904_v26 = vmul.f32 %v2116_v23, %v1902_v1  ;;  %vm1890_vm2 = vmor %vm1888_vm1, %vm1889_vm10  ;;  %vm1909_vm3 = vweird.f32 %v2116_v23 }
 0x571   :  { %v1885_v27 = vsub.f32 1.0, %v1884_v32  ;;  %vm1910_vm5 = vmor %vm1908_vm4, %vm1909_vm3 }
 0x572   :  { %v1905_v29 = vsub.f32 1.0, %v1904_v26 }
 0x573   :  { %v1886_v2 = vmul.f32 %v2114_v13, %v1885_v27 }
 0x574   :  { %v1906_v10 = vmul.f32 %v2116_v23, %v1905_v29 }
 0x575   :  { %v1887_v33 = vadd.f32 %v2114_v13, %v1886_v2 }
 0x576   :  { %v1907_v42 = vadd.f32 %v2116_v23, %v1906_v10 }
 0x577   :  { %v1891_v19 = vsel %vm1890_vm2, %v2114_v13, %v1887_v33 }
 0x578   :  { %v1896_v45 = vsel %vm1893_vm11, %v1895_v35, %v1891_v19  ;;  %v1911_v49 = vsel %vm1910_vm5, %v2116_v23, %v1907_v42 }
 0x579   :  { %v1919_v7 = vmul.f32 %v1918_v55, %v1896_v45  ;;  %v1916_v50 = vsel %vm1913_vm6, %v1915_v12, %v1911_v49 }
 0x57a   :  { %v1922_v52 = vsub.f32 1.0, %v1916_v50  ;;  %v1924_v21 = vmul.f32 %v1916_v50, %v3262_v59 }
 0x57b   :  { %v1920_v38 = vadd.f32 %v1919_v7, %v1812_v43 }
 0x57d   :  { %2117 = vtanh.f32 %v1920_v38 }
 0x583   :  { %v2118_v56 = vpop.eup %2117 }
 0x584   :  { %v1923_v25 = vmul.f32 %v2118_v56, %v1922_v52 }
 0x586   :  { %v1925_v11 = vadd.f32 %v1924_v21, %v1923_v25 }
 0x588   :  { %v1934_v9 = vsel %vm1933_vm12, %v1925_v11, %v3262_v59  ;;  %v1935_v54 = vsel %vm1933_vm12, %v1925_v11, 0.0 }
 0x589   :  { %v1937_v24 = vrot.slane %v1935_v54, 1  ;;  %v1938_v39 = vrot.slane %v1935_v54, 2  ;;  %v1939_v28 = vrot.slane %v1935_v54, 3  ;;  %1951 = vst.msk [vmem:[%s3347_s5 + $0x7] sm:$0x1] %vm298_vm13, %v1935_v54  ;;  %v1940_v47 = vrot.slane %v1935_v54, 4 }
 0x58a   :  { %1959 = vst.msk [vmem:[#allocation2] sm:$0xff] %vm26_vm0, %v1934_v9  ;;  %v1941_v5 = vrot.slane %v1935_v54, 5  ;;  %v1942_v34 = vrot.slane %v1935_v54, 6  ;;  %v1943_v44 = vrot.slane %v1935_v54, 7 }
 0x58b   :  { %1952 = vst.msk [vmem:[%s3347_s5 + $0xf] sm:$0x1] %vm298_vm13, %v1937_v24 }
 0x58c   :  { %1953 = vst.msk [vmem:[%s3347_s5 + $0x17] sm:$0x1] %vm298_vm13, %v1938_v39 }
 0x58d   :  { %1954 = vst.msk [vmem:[%s3347_s5 + $0x1f] sm:$0x1] %vm298_vm13, %v1939_v28 }
 0x58e   :  { %1955 = vst.msk [vmem:[%s3347_s5 + $0x27] sm:$0x1] %vm298_vm13, %v1940_v47 }
 0x58f   :  { %1956 = vst.msk [vmem:[%s3347_s5 + $0x2f] sm:$0x1] %vm298_vm13, %v1941_v5 }
 0x590   :  { %1957 = vst.msk [vmem:[%s3347_s5 + $0x37] sm:$0x1] %vm298_vm13, %v1942_v34 }
 0x591   :  { %1958 = vst.msk [vmem:[%s3347_s5 + $0x3f] sm:$0x1] %vm298_vm13, %v1943_v44 }
 0x592   :  { %1960 = vst.msk [vmem:[%s3348_s6] sm:$0xff] %vm26_vm0, %v1934_v9 }

</bundles_post_ra>
